<compile_context>
chip_gen: v5e
topology: v5e:2x2
jax: 0.10.0
libtpu: 0.0.40
codegen_flags: <defaults>
</compile_context>

<pallas_src>
import jax
import jax.numpy as jnp
from jax.experimental import pallas as pl
from jax.experimental.pallas import tpu as pltpu


# ------------------------------ kernel builder --------------------------------

def _make_resblock_kernel(TH, H, W, Cin, Chid, Cout, num_strips, compute_dtype):
    """Fused Resblock kernel for one (batch, H-strip) grid cell."""
    approx_recip = (compute_dtype != jnp.float32)

    def mish(x):
        # mish(x) = x * tanh(softplus(x)) == x * u(u+2)/(u(u+2)+2), u=exp(x).
        # Single transcendental per element; x>20 passthrough matches PyTorch's
        # softplus threshold behaviour and avoids overflow.
        u = jnp.exp(jnp.minimum(x, 20.0))
        n = u * (u + 2.0)
        if approx_recip:
            y = x * n * pl.reciprocal(n + 2.0, approx=True)
        else:
            y = x * n / (n + 2.0)
        return jnp.where(x > 20.0, x, y)

    def kernel(x_ref, w1_ref, w2_ref, b1_ref, b2_ref, o_ref, hpad_ref):
        # x_ref   : (H, W, Cin)        full image, VMEM-resident across strips
        # w1_ref  : (Cin, Chid)        1x1 conv weight, BN scale pre-folded
        # w2_ref  : (9*Chid, Cout)     3x3 conv weight [dy, dx, cin], BN folded
        # b*_ref  : (1, C)             folded BatchNorm biases (f32)
        # o_ref   : (TH, W, Cout)      output strip
        # hpad_ref: (TH+2, W+2, Chid)  hidden activation + conv padding halo
        s = pl.program_id(1)
        row0 = pl.multiple_of(s * TH, TH)

        w1 = w1_ref[...]  # tiny; load once

        def conv1_bn_mish(x_rows):
            # 1x1 conv (BN scale folded into w1) + bias + Mish on (R, W, Cin).
            xb = x_rows.astype(compute_dtype)
            h = jnp.einsum('rwc,cd->rwd', xb, w1,
                           preferred_element_type=jnp.float32)
            return mish(h + b1_ref[...]).astype(compute_dtype)

        zero_row = jnp.zeros((1, W + 2, Chid), compute_dtype)
        zero_col = jnp.zeros((TH + 2, 1, Chid), compute_dtype)

        # Left/right padding=1 columns.  Re-written every strip: the scratch
        # persists per-core and the grid is sharded across cores, so a
        # "zero once" guard is not safe; these two stores are tiny.
        hpad_ref[:, 0:1, :] = zero_col
        hpad_ref[:, W + 1:W + 2, :] = zero_col

        # ---- stage 1: hidden activation (interior + halo) in ONE matmul -----
        if num_strips == 1:
            hpad_ref[1:TH + 1, 1:W + 1, :] = conv1_bn_mish(x_ref[...])
            hpad_ref[0:1, :, :] = zero_row
            hpad_ref[TH + 1:TH + 2, :, :] = zero_row
        else:
            if num_strips >= 3:
                @pl.when(jnp.logical_and(s > 0, s < num_strips - 1))
                def _():
                    # rows row0-1 .. row0+TH  (both halos exist)
                    x_slab = x_ref[pl.ds(row0 - 1, TH + 2), :, :]
                    hpad_ref[0:TH + 2, 1:W + 1, :] = conv1_bn_mish(x_slab)

            @pl.when(s == 0)
            def _():
                # rows 0 .. TH (bottom halo exists, top is conv padding)
                x_slab = x_ref[pl.ds(0, TH + 1), :, :]
                hpad_ref[1:TH + 2, 1:W + 1, :] = conv1_bn_mish(x_slab)
                hpad_ref[0:1, :, :] = zero_row

            @pl.when(s == num_strips - 1)
            def _():
                # rows row0-1 .. H-1 (top halo exists, bottom is conv padding)
                x_slab = x_ref[pl.ds(row0 - 1, TH + 1), :, :]
                hpad_ref[0:TH + 1, 1:W + 1, :] = conv1_bn_mish(x_slab)
                hpad_ref[TH + 1:TH + 2, :, :] = zero_row

        # ---- stage 2: 3x3 conv as ONE matmul with K = 9*Chid -----------------
        taps = []
        for dy in range(3):
            rows = hpad_ref[dy:dy + TH, :, :]              # (TH, W+2, Chid)
            for dx in range(3):
                taps.append(rows[:, dx:dx + W, :])         # (TH, W, Chid)
        patch = jnp.concatenate(taps, axis=-1)             # (TH, W, 9*Chid)
        y = jnp.einsum('hwk,ko->hwo', patch, w2_ref[...],
                       preferred_element_type=jnp.float32)

        # folded BN bias + Mish + residual add (all f32), single store
        y = mish(y + b2_ref[...])
        residual = x_ref[pl.ds(row0, TH), :, :].astype(jnp.float32)
        o_ref[...] = (y + residual).astype(o_ref.dtype)

    return kernel


# --------------------------------- wrappers ------------------------------------

def _pick_strip_rows(H, strip_rows):
    """Largest divisor of H that is <= strip_rows (falls back to H)."""
    best = 1
    for d in range(1, min(strip_rows, H) + 1):
        if H % d == 0:
            best = d
    if best < 2:            # degenerate (e.g. prime H): one whole-image strip
        best = H
    return best


def resblock_forward_nhwc(x_nhwc, params, *, strip_rows=32,
                          compute_dtype=jnp.bfloat16):
    """Fused Resblock forward in NHWC.

    x_nhwc: (N, H, W, C); dtype f32 or bf16 (bf16 in/out halves HBM traffic).
    Output dtype == input dtype.  Primary (production) entry point.
    """
    N, H, W, Cin = x_nhwc.shape
    Chid = params['w1'].shape[1]
    Cout = params['w2'].shape[3]
    assert Cout == Cin, "Resblock requires conv2 out_channels == in_channels"

    th = _pick_strip_rows(H, strip_rows)
    num_strips = H // th

    # Fold BN scales into conv weight columns (f32 fold, then MXU cast);
    # only biases stay as per-channel adds in the kernel.
    w1 = (params['w1'] * params['s1'][None, :]).astype(compute_dtype)
    w2 = (params['w2'] * params['s2'][None, None, None, :]
          ).reshape(9 * Chid, Cout).astype(compute_dtype)
    b1 = params['b1'].reshape(1, Chid).astype(jnp.float32)
    b2 = params['b2'].reshape(1, Cout).astype(jnp.float32)

    kernel = _make_resblock_kernel(th, H, W, Cin, Chid, Cout, num_strips,
                                   compute_dtype)

    # VMEM limit from the actual chip (v5e/v6e: 128 MiB, v7x: 64 MiB).
    try:
        vmem_cap = pltpu.get_tpu_info().vmem_capacity_bytes
        vmem_limit = int(min(100 * 1024 * 1024,
                             max(32 * 1024 * 1024, int(vmem_cap * 0.75))))
    except Exception:   # pragma: no cover - conservative fallback
        vmem_limit = 64 * 1024 * 1024

    return pl.pallas_call(
        kernel,
        out_shape=jax.ShapeDtypeStruct((N, H, W, Cout), x_nhwc.dtype),
        grid=(N, num_strips),
        in_specs=[
            # x: same block index across the strip axis -> stays VMEM-resident
            pl.BlockSpec((None, H, W, Cin), lambda n, s: (n, 0, 0, 0)),
            pl.BlockSpec((Cin, Chid), lambda n, s: (0, 0)),
            pl.BlockSpec((9 * Chid, Cout), lambda n, s: (0, 0)),
            pl.BlockSpec((1, Chid), lambda n, s: (0, 0)),
            pl.BlockSpec((1, Cout), lambda n, s: (0, 0)),
        ],
        out_specs=pl.BlockSpec((None, th, W, Cout), lambda n, s: (n, s, 0, 0)),
        scratch_shapes=[
            pltpu.VMEM((th + 2, W + 2, Chid), compute_dtype),  # padded hidden h
        ],
        compiler_params=pltpu.CompilerParams(
            dimension_semantics=("parallel", "parallel"),
            vmem_limit_bytes=vmem_limit),
    )(x_nhwc, w1, w2, b1, b2)


def resblock_forward(x_nchw, params, **kwargs):
    """NCHW wrapper matching the PyTorch module API.

    NOTE: in an NHWC end-to-end network, call resblock_forward_nhwc directly;
    these boundary transposes are extra HBM passes and dominate wall time in
    the memory-bound regime.
    """
    x = jnp.transpose(x_nchw, (0, 2, 3, 1))   # NCHW -> NHWC
    y = resblock_forward_nhwc(x, params, **kwargs)
    return jnp.transpose(y, (0, 3, 1, 2))     # NHWC -> NCHW


# ----------------------------- pure-JAX reference ------------------------------

def _mish_ref(x):
    return x * jnp.tanh(jax.nn.softplus(x))


def resblock_reference(x_nchw, params):
    x = jnp.transpose(x_nchw, (0, 2, 3, 1))
    # 1x1 conv + BN + Mish
    h = jnp.einsum('nhwc,co->nhwo', x, params['w1'])
    h = _mish_ref(h * params['s1'] + params['b1'])
    # 3x3 conv (pad 1) + BN + Mish
    h = jax.lax.conv_general_dilated(
        h, params['w2'], window_strides=(1, 1), padding=((1, 1), (1, 1)),
        dimension_numbers=('NHWC', 'HWIO', 'NHWC'))
    h = _mish_ref(h * params['s2'] + params['b2'])
    y = x + h
    return jnp.transpose(y, (0, 3, 1, 2))


# ----------------------------------- params ------------------------------------

def make_params(channels, hidden, key):
    k = jax.random.split(key, 10)
    eps = 1e-5
    w1 = jax.random.normal(k[0], (channels, hidden), jnp.float32) * 0.2
    w2 = jax.random.normal(k[1], (3, 3, hidden, channels), jnp.float32) * 0.1
    g1 = 1.0 + 0.1 * jax.random.normal(k[2], (hidden,), jnp.float32)
    b1 = 0.1 * jax.random.normal(k[3], (hidden,), jnp.float32)
    m1 = 0.05 * jax.random.normal(k[4], (hidden,), jnp.float32)
    v1 = 1.0 + 0.1 * jnp.abs(jax.random.normal(k[5], (hidden,), jnp.float32))
    g2 = 1.0 + 0.1 * jax.random.normal(k[6], (channels,), jnp.float32)
    b2 = 0.1 * jax.random.normal(k[7], (channels,), jnp.float32)
    m2 = 0.05 * jax.random.normal(k[8], (channels,), jnp.float32)
    v2 = 1.0 + 0.1 * jnp.abs(jax.random.normal(k[9], (channels,), jnp.float32))
    s1 = g1 / jnp.sqrt(v1 + eps)
    s2 = g2 / jnp.sqrt(v2 + eps)
    return dict(w1=w1, w2=w2,
                s1=s1, b1=b1 - m1 * s1,
                s2=s2, b2=b2 - m2 * s2)


# ------------------------------------ main --------------------------------------

if __name__ == "__main__":
    N, C, H, W = 2, 4, 16, 16
    hidden = C  # Resblock default: hidden_channels = channels

    key = jax.random.PRNGKey(0)
    kx, kp = jax.random.split(key)
    x = jax.random.normal(kx, (N, C, H, W), jnp.float32)
    params = make_params(C, hidden, kp)

    ref = resblock_reference(x, params)

    # f32 MXU path, 4 strips (exercises first / interior / last branches).
    out = jax.block_until_ready(
        resblock_forward(x, params, strip_rows=4, compute_dtype=jnp.float32))
    assert out.shape == (N, C, H, W)
    assert jnp.allclose(out, ref, atol=1e-4, rtol=1e-4), (
        float(jnp.max(jnp.abs(out - ref))))

    # f32 MXU path, 2 strips (boundary-only branches).
    out = jax.block_until_ready(
        resblock_forward(x, params, strip_rows=8, compute_dtype=jnp.float32))
    assert jnp.allclose(out, ref, atol=1e-4, rtol=1e-4), (
        float(jnp.max(jnp.abs(out - ref))))

    # Default production config: bf16 MXU inputs, single strip at this small H.
    out_bf16 = jax.block_until_ready(resblock_forward(x, params))
    assert out_bf16.shape == (N, C, H, W)
    assert jnp.allclose(out_bf16, ref, atol=5e-2, rtol=5e-2), (
        float(jnp.max(jnp.abs(out_bf16 - ref))))

    # bf16 activations end-to-end through the NHWC entry point (halved HBM I/O).
    x_nhwc_bf16 = jnp.transpose(x, (0, 2, 3, 1)).astype(jnp.bfloat16)
    y_nhwc = jax.block_until_ready(
        resblock_forward_nhwc(x_nhwc_bf16, params, strip_rows=4))
    assert y_nhwc.dtype == jnp.bfloat16
    y_nchw = jnp.transpose(y_nhwc.astype(jnp.float32), (0, 3, 1, 2))
    assert jnp.allclose(y_nchw, ref, atol=1e-1, rtol=1e-1), (
        float(jnp.max(jnp.abs(y_nchw - ref))))

    print("KERNEL_OK")
</pallas_src>

<mosaic_0001>
module attributes {stable_mosaic.version = 11 : i64} {
  func.func @kernel(%arg0: i32, %arg1: i32, %arg2: memref<1x16x16x4xf32, #tpu.memory_space<vmem>>, %arg3: memref<4x4xf32, #tpu.memory_space<vmem>>, %arg4: memref<36x4xf32, #tpu.memory_space<vmem>>, %arg5: memref<1x4xf32, #tpu.memory_space<vmem>>, %arg6: memref<1x4xf32, #tpu.memory_space<vmem>>, %arg7: memref<1x4x16x4xf32, #tpu.memory_space<vmem>>, %arg8: memref<6x18x4xf32, #tpu.memory_space<vmem>>) attributes {dimension_semantics = [#tpu.dimension_semantics<parallel>, #tpu.dimension_semantics<parallel>], iteration_bounds = array<i64: 2, 4>, scalar_prefetch = 0 : i64, scratch_operands = 1 : i64, tpu.core_type = #tpu.core_type<tc>, window_params = [{transform_indices = @transform_0, window_bounds = array<i64: 1, 16, 16, 4>}, {pipeline_mode = #tpu.pipeline_mode<synchronous>, transform_indices = @transform_1, window_bounds = array<i64: 4, 4>}, {pipeline_mode = #tpu.pipeline_mode<synchronous>, transform_indices = @transform_2, window_bounds = array<i64: 36, 4>}, {pipeline_mode = #tpu.pipeline_mode<synchronous>, transform_indices = @transform_3, window_bounds = array<i64: 1, 4>}, {pipeline_mode = #tpu.pipeline_mode<synchronous>, transform_indices = @transform_4, window_bounds = array<i64: 1, 4>}, {transform_indices = @transform_5, window_bounds = array<i64: 1, 4, 16, 4>}]} {
    %c4_i32 = arith.constant 4 : i32
    %0 = arith.muli %arg1, %c4_i32 : i32
    %1 = tpu.assume_multiple %0, 4 : i32
    %c0 = arith.constant 0 : index
    %c0_0 = arith.constant 0 : index
    %2 = vector.load %arg3[%c0, %c0_0] : memref<4x4xf32, #tpu.memory_space<vmem>>, vector<4x4xf32>
    %cst = arith.constant 0.000000e+00 : f32
    %3 = vector.broadcast %cst : f32 to vector<1x18x4xf32>
    %cst_1 = arith.constant 0.000000e+00 : f32
    %4 = vector.broadcast %cst_1 : f32 to vector<6x1x4xf32>
    %c0_2 = arith.constant 0 : index
    %c0_3 = arith.constant 0 : index
    %c0_4 = arith.constant 0 : index
    %5 = vector.load %arg8[%c0_2, %c0_3, %c0_4] : memref<6x18x4xf32, #tpu.memory_space<vmem>>, vector<6x1x4xf32>
    tpu.vector_store %arg8[%c0_2, %c0_3, %c0_4], %4 {strides = array<i32>} : memref<6x18x4xf32, #tpu.memory_space<vmem>>, vector<6x1x4xf32>,
    %c0_5 = arith.constant 0 : index
    %c17 = arith.constant 17 : index
    %c0_6 = arith.constant 0 : index
    %6 = vector.load %arg8[%c0_5, %c17, %c0_6] : memref<6x18x4xf32, #tpu.memory_space<vmem>>, vector<6x1x4xf32>
    tpu.vector_store %arg8[%c0_5, %c17, %c0_6], %4 {strides = array<i32>} : memref<6x18x4xf32, #tpu.memory_space<vmem>>, vector<6x1x4xf32>,
    %c0_i32 = arith.constant 0 : i32
    %7 = arith.cmpi sgt, %arg1, %c0_i32 : i32
    %c3_i32 = arith.constant 3 : i32
    %8 = arith.cmpi slt, %arg1, %c3_i32 : i32
    %9 = arith.andi %7, %8 : i1
    %10 = arith.extui %9 : i1 to i32
    %c0_i32_7 = arith.constant 0 : i32
    %11 = arith.cmpi ne, %10, %c0_i32_7 : i32
    scf.if %11 {
      %c1_i32 = arith.constant 1 : i32
      %57 = arith.subi %1, %c1_i32 : i32
      %c0_35 = arith.constant 0 : index
      %58 = arith.index_cast %57 : i32 to index
      %c0_36 = arith.constant 0 : index
      %c0_37 = arith.constant 0 : index
      %59 = vector.load %arg2[%c0_35, %58, %c0_36, %c0_37] : memref<1x16x16x4xf32, #tpu.memory_space<vmem>>, vector<1x6x16x4xf32>
      %60 = vector.shape_cast %59 : vector<1x6x16x4xf32> to vector<6x16x4xf32>
      "tpu.trace_start"() <{level = 10 : i32, message = "rwc,cd->rwd"}> : () -> ()
      %cst_38 = arith.constant dense<0.000000e+00> : vector<6x16x4xf32>
      %61 = tpu.matmul %60, %2, %cst_38 {dimension_numbers = #tpu.dot_dimension_numbers<[2], [0], [0, 1], [1], [0, 0, 0, 1, 1, 1], [], []>} : vector<6x16x4xf32>, vector<4x4xf32>, vector<6x16x4xf32> -> vector<6x16x4xf32>
      "tpu.trace_stop"() : () -> ()
      %c0_39 = arith.constant 0 : index
      %c0_40 = arith.constant 0 : index
      %62 = vector.load %arg5[%c0_39, %c0_40] : memref<1x4xf32, #tpu.memory_space<vmem>>, vector<1x4xf32>
      %63 = vector.shape_cast %62 : vector<1x4xf32> to vector<1x1x4xf32>
      %64 = vector.broadcast %63 : vector<1x1x4xf32> to vector<6x16x4xf32>
      %65 = arith.addf %61, %64 : vector<6x16x4xf32>
      %cst_41 = arith.constant 2.000000e+01 : f32
      %66 = vector.broadcast %cst_41 : f32 to vector<6x16x4xf32>
      %67 = arith.minimumf %65, %66 : vector<6x16x4xf32>
      %68 = math.exp %67 : vector<6x16x4xf32>
      %cst_42 = arith.constant 2.000000e+00 : f32
      %69 = vector.broadcast %cst_42 : f32 to vector<6x16x4xf32>
      %70 = arith.addf %68, %69 : vector<6x16x4xf32>
      %71 = arith.mulf %68, %70 : vector<6x16x4xf32>
      %72 = arith.mulf %65, %71 : vector<6x16x4xf32>
      %cst_43 = arith.constant 2.000000e+00 : f32
      %73 = vector.broadcast %cst_43 : f32 to vector<6x16x4xf32>
      %74 = arith.addf %71, %73 : vector<6x16x4xf32>
      %75 = arith.divf %72, %74 : vector<6x16x4xf32>
      %cst_44 = arith.constant 2.000000e+01 : f32
      %76 = vector.broadcast %cst_44 : f32 to vector<6x16x4xf32>
      %77 = arith.cmpf ogt, %65, %76 : vector<6x16x4xf32>
      %78 = arith.select %77, %65, %75 : vector<6x16x4xi1>, vector<6x16x4xf32>
      %c0_45 = arith.constant 0 : index
      %c1_46 = arith.constant 1 : index
      %c0_47 = arith.constant 0 : index
      %79 = vector.load %arg8[%c0_45, %c1_46, %c0_47] : memref<6x18x4xf32, #tpu.memory_space<vmem>>, vector<6x16x4xf32>
      tpu.vector_store %arg8[%c0_45, %c1_46, %c0_47], %78 {strides = array<i32>} : memref<6x18x4xf32, #tpu.memory_space<vmem>>, vector<6x16x4xf32>,
    } else {
    }
    %c0_i32_8 = arith.constant 0 : i32
    %12 = arith.cmpi eq, %arg1, %c0_i32_8 : i32
    %13 = arith.extui %12 : i1 to i32
    %c0_i32_9 = arith.constant 0 : i32
    %14 = arith.cmpi ne, %13, %c0_i32_9 : i32
    scf.if %14 {
      %c0_35 = arith.constant 0 : index
      %c0_36 = arith.constant 0 : index
      %c0_37 = arith.constant 0 : index
      %c0_38 = arith.constant 0 : index
      %57 = vector.load %arg2[%c0_35, %c0_36, %c0_37, %c0_38] : memref<1x16x16x4xf32, #tpu.memory_space<vmem>>, vector<1x5x16x4xf32>
      %58 = vector.shape_cast %57 : vector<1x5x16x4xf32> to vector<5x16x4xf32>
      "tpu.trace_start"() <{level = 10 : i32, message = "rwc,cd->rwd"}> : () -> ()
      %cst_39 = arith.constant dense<0.000000e+00> : vector<5x16x4xf32>
      %59 = tpu.matmul %58, %2, %cst_39 {dimension_numbers = #tpu.dot_dimension_numbers<[2], [0], [0, 1], [1], [0, 0, 0, 1, 1, 1], [], []>} : vector<5x16x4xf32>, vector<4x4xf32>, vector<5x16x4xf32> -> vector<5x16x4xf32>
      "tpu.trace_stop"() : () -> ()
      %c0_40 = arith.constant 0 : index
      %c0_41 = arith.constant 0 : index
      %60 = vector.load %arg5[%c0_40, %c0_41] : memref<1x4xf32, #tpu.memory_space<vmem>>, vector<1x4xf32>
      %61 = vector.shape_cast %60 : vector<1x4xf32> to vector<1x1x4xf32>
      %62 = vector.broadcast %61 : vector<1x1x4xf32> to vector<5x16x4xf32>
      %63 = arith.addf %59, %62 : vector<5x16x4xf32>
      %cst_42 = arith.constant 2.000000e+01 : f32
      %64 = vector.broadcast %cst_42 : f32 to vector<5x16x4xf32>
      %65 = arith.minimumf %63, %64 : vector<5x16x4xf32>
      %66 = math.exp %65 : vector<5x16x4xf32>
      %cst_43 = arith.constant 2.000000e+00 : f32
      %67 = vector.broadcast %cst_43 : f32 to vector<5x16x4xf32>
      %68 = arith.addf %66, %67 : vector<5x16x4xf32>
      %69 = arith.mulf %66, %68 : vector<5x16x4xf32>
      %70 = arith.mulf %63, %69 : vector<5x16x4xf32>
      %cst_44 = arith.constant 2.000000e+00 : f32
      %71 = vector.broadcast %cst_44 : f32 to vector<5x16x4xf32>
      %72 = arith.addf %69, %71 : vector<5x16x4xf32>
      %73 = arith.divf %70, %72 : vector<5x16x4xf32>
      %cst_45 = arith.constant 2.000000e+01 : f32
      %74 = vector.broadcast %cst_45 : f32 to vector<5x16x4xf32>
      %75 = arith.cmpf ogt, %63, %74 : vector<5x16x4xf32>
      %76 = arith.select %75, %63, %73 : vector<5x16x4xi1>, vector<5x16x4xf32>
      %c1_46 = arith.constant 1 : index
      %c1_47 = arith.constant 1 : index
      %c0_48 = arith.constant 0 : index
      %77 = vector.load %arg8[%c1_46, %c1_47, %c0_48] : memref<6x18x4xf32, #tpu.memory_space<vmem>>, vector<5x16x4xf32>
      tpu.vector_store %arg8[%c1_46, %c1_47, %c0_48], %76 {strides = array<i32>} : memref<6x18x4xf32, #tpu.memory_space<vmem>>, vector<5x16x4xf32>,
      %c0_49 = arith.constant 0 : index
      %c0_50 = arith.constant 0 : index
      %c0_51 = arith.constant 0 : index
      %78 = vector.load %arg8[%c0_49, %c0_50, %c0_51] : memref<6x18x4xf32, #tpu.memory_space<vmem>>, vector<1x18x4xf32>
      tpu.vector_store %arg8[%c0_49, %c0_50, %c0_51], %3 {strides = array<i32>} : memref<6x18x4xf32, #tpu.memory_space<vmem>>, vector<1x18x4xf32>,
    } else {
    }
    %c3_i32_10 = arith.constant 3 : i32
    %15 = arith.cmpi eq, %arg1, %c3_i32_10 : i32
    %16 = arith.extui %15 : i1 to i32
    %c0_i32_11 = arith.constant 0 : i32
    %17 = arith.cmpi ne, %16, %c0_i32_11 : i32
    scf.if %17 {
      %c1_i32 = arith.constant 1 : i32
      %57 = arith.subi %1, %c1_i32 : i32
      %c0_35 = arith.constant 0 : index
      %58 = arith.index_cast %57 : i32 to index
      %c0_36 = arith.constant 0 : index
      %c0_37 = arith.constant 0 : index
      %59 = vector.load %arg2[%c0_35, %58, %c0_36, %c0_37] : memref<1x16x16x4xf32, #tpu.memory_space<vmem>>, vector<1x5x16x4xf32>
      %60 = vector.shape_cast %59 : vector<1x5x16x4xf32> to vector<5x16x4xf32>
      "tpu.trace_start"() <{level = 10 : i32, message = "rwc,cd->rwd"}> : () -> ()
      %cst_38 = arith.constant dense<0.000000e+00> : vector<5x16x4xf32>
      %61 = tpu.matmul %60, %2, %cst_38 {dimension_numbers = #tpu.dot_dimension_numbers<[2], [0], [0, 1], [1], [0, 0, 0, 1, 1, 1], [], []>} : vector<5x16x4xf32>, vector<4x4xf32>, vector<5x16x4xf32> -> vector<5x16x4xf32>
      "tpu.trace_stop"() : () -> ()
      %c0_39 = arith.constant 0 : index
      %c0_40 = arith.constant 0 : index
      %62 = vector.load %arg5[%c0_39, %c0_40] : memref<1x4xf32, #tpu.memory_space<vmem>>, vector<1x4xf32>
      %63 = vector.shape_cast %62 : vector<1x4xf32> to vector<1x1x4xf32>
      %64 = vector.broadcast %63 : vector<1x1x4xf32> to vector<5x16x4xf32>
      %65 = arith.addf %61, %64 : vector<5x16x4xf32>
      %cst_41 = arith.constant 2.000000e+01 : f32
      %66 = vector.broadcast %cst_41 : f32 to vector<5x16x4xf32>
      %67 = arith.minimumf %65, %66 : vector<5x16x4xf32>
      %68 = math.exp %67 : vector<5x16x4xf32>
      %cst_42 = arith.constant 2.000000e+00 : f32
      %69 = vector.broadcast %cst_42 : f32 to vector<5x16x4xf32>
      %70 = arith.addf %68, %69 : vector<5x16x4xf32>
      %71 = arith.mulf %68, %70 : vector<5x16x4xf32>
      %72 = arith.mulf %65, %71 : vector<5x16x4xf32>
      %cst_43 = arith.constant 2.000000e+00 : f32
      %73 = vector.broadcast %cst_43 : f32 to vector<5x16x4xf32>
      %74 = arith.addf %71, %73 : vector<5x16x4xf32>
      %75 = arith.divf %72, %74 : vector<5x16x4xf32>
      %cst_44 = arith.constant 2.000000e+01 : f32
      %76 = vector.broadcast %cst_44 : f32 to vector<5x16x4xf32>
      %77 = arith.cmpf ogt, %65, %76 : vector<5x16x4xf32>
      %78 = arith.select %77, %65, %75 : vector<5x16x4xi1>, vector<5x16x4xf32>
      %c0_45 = arith.constant 0 : index
      %c1_46 = arith.constant 1 : index
      %c0_47 = arith.constant 0 : index
      %79 = vector.load %arg8[%c0_45, %c1_46, %c0_47] : memref<6x18x4xf32, #tpu.memory_space<vmem>>, vector<5x16x4xf32>
      tpu.vector_store %arg8[%c0_45, %c1_46, %c0_47], %78 {strides = array<i32>} : memref<6x18x4xf32, #tpu.memory_space<vmem>>, vector<5x16x4xf32>,
      %c5 = arith.constant 5 : index
      %c0_48 = arith.constant 0 : index
      %c0_49 = arith.constant 0 : index
      %80 = vector.load %arg8[%c5, %c0_48, %c0_49] : memref<6x18x4xf32, #tpu.memory_space<vmem>>, vector<1x18x4xf32>
      tpu.vector_store %arg8[%c5, %c0_48, %c0_49], %3 {strides = array<i32>} : memref<6x18x4xf32, #tpu.memory_space<vmem>>, vector<1x18x4xf32>,
    } else {
    }
    %c0_12 = arith.constant 0 : index
    %c0_13 = arith.constant 0 : index
    %c0_14 = arith.constant 0 : index
    %18 = vector.load %arg8[%c0_12, %c0_13, %c0_14] : memref<6x18x4xf32, #tpu.memory_space<vmem>>, vector<4x18x4xf32>
    %19 = vector.extract_strided_slice %18 {offsets = [0, 0, 0], sizes = [4, 16, 4], strides = [1, 1, 1]} : vector<4x18x4xf32> to vector<4x16x4xf32>
    %20 = vector.extract_strided_slice %18 {offsets = [0, 1, 0], sizes = [4, 16, 4], strides = [1, 1, 1]} : vector<4x18x4xf32> to vector<4x16x4xf32>
    %21 = vector.extract_strided_slice %18 {offsets = [0, 2, 0], sizes = [4, 16, 4], strides = [1, 1, 1]} : vector<4x18x4xf32> to vector<4x16x4xf32>
    %c1 = arith.constant 1 : index
    %c0_15 = arith.constant 0 : index
    %c0_16 = arith.constant 0 : index
    %22 = vector.load %arg8[%c1, %c0_15, %c0_16] : memref<6x18x4xf32, #tpu.memory_space<vmem>>, vector<4x18x4xf32>
    %23 = vector.extract_strided_slice %22 {offsets = [0, 0, 0], sizes = [4, 16, 4], strides = [1, 1, 1]} : vector<4x18x4xf32> to vector<4x16x4xf32>
    %24 = vector.extract_strided_slice %22 {offsets = [0, 1, 0], sizes = [4, 16, 4], strides = [1, 1, 1]} : vector<4x18x4xf32> to vector<4x16x4xf32>
    %25 = vector.extract_strided_slice %22 {offsets = [0, 2, 0], sizes = [4, 16, 4], strides = [1, 1, 1]} : vector<4x18x4xf32> to vector<4x16x4xf32>
    %c2 = arith.constant 2 : index
    %c0_17 = arith.constant 0 : index
    %c0_18 = arith.constant 0 : index
    %26 = vector.load %arg8[%c2, %c0_17, %c0_18] : memref<6x18x4xf32, #tpu.memory_space<vmem>>, vector<4x18x4xf32>
    %27 = vector.extract_strided_slice %26 {offsets = [0, 0, 0], sizes = [4, 16, 4], strides = [1, 1, 1]} : vector<4x18x4xf32> to vector<4x16x4xf32>
    %28 = vector.extract_strided_slice %26 {offsets = [0, 1, 0], sizes = [4, 16, 4], strides = [1, 1, 1]} : vector<4x18x4xf32> to vector<4x16x4xf32>
    %29 = vector.extract_strided_slice %26 {offsets = [0, 2, 0], sizes = [4, 16, 4], strides = [1, 1, 1]} : vector<4x18x4xf32> to vector<4x16x4xf32>
    %30 = tpu.concatenate %19, %20, %21, %23, %24, %25, %27, %28, %29 in 2 : vector<4x16x4xf32>, vector<4x16x4xf32>, vector<4x16x4xf32>, vector<4x16x4xf32>, vector<4x16x4xf32>, vector<4x16x4xf32>, vector<4x16x4xf32>, vector<4x16x4xf32>, vector<4x16x4xf32> -> vector<4x16x36xf32>
    %c0_19 = arith.constant 0 : index
    %c0_20 = arith.constant 0 : index
    %31 = vector.load %arg4[%c0_19, %c0_20] : memref<36x4xf32, #tpu.memory_space<vmem>>, vector<36x4xf32>
    "tpu.trace_start"() <{level = 10 : i32, message = "hwk,ko->hwo"}> : () -> ()
    %cst_21 = arith.constant dense<0.000000e+00> : vector<4x16x4xf32>
    %32 = tpu.matmul %30, %31, %cst_21 {dimension_numbers = #tpu.dot_dimension_numbers<[2], [0], [0, 1], [1], [0, 0, 0, 1, 1, 1], [], []>} : vector<4x16x36xf32>, vector<36x4xf32>, vector<4x16x4xf32> -> vector<4x16x4xf32>
    "tpu.trace_stop"() : () -> ()
    %c0_22 = arith.constant 0 : index
    %c0_23 = arith.constant 0 : index
    %33 = vector.load %arg6[%c0_22, %c0_23] : memref<1x4xf32, #tpu.memory_space<vmem>>, vector<1x4xf32>
    %34 = vector.shape_cast %33 : vector<1x4xf32> to vector<1x1x4xf32>
    %35 = vector.broadcast %34 : vector<1x1x4xf32> to vector<4x16x4xf32>
    %36 = arith.addf %32, %35 : vector<4x16x4xf32>
    %cst_24 = arith.constant 2.000000e+01 : f32
    %37 = vector.broadcast %cst_24 : f32 to vector<4x16x4xf32>
    %38 = arith.minimumf %36, %37 : vector<4x16x4xf32>
    %39 = math.exp %38 : vector<4x16x4xf32>
    %cst_25 = arith.constant 2.000000e+00 : f32
    %40 = vector.broadcast %cst_25 : f32 to vector<4x16x4xf32>
    %41 = arith.addf %39, %40 : vector<4x16x4xf32>
    %42 = arith.mulf %39, %41 : vector<4x16x4xf32>
    %43 = arith.mulf %36, %42 : vector<4x16x4xf32>
    %cst_26 = arith.constant 2.000000e+00 : f32
    %44 = vector.broadcast %cst_26 : f32 to vector<4x16x4xf32>
    %45 = arith.addf %42, %44 : vector<4x16x4xf32>
    %46 = arith.divf %43, %45 : vector<4x16x4xf32>
    %cst_27 = arith.constant 2.000000e+01 : f32
    %47 = vector.broadcast %cst_27 : f32 to vector<4x16x4xf32>
    %48 = arith.cmpf ogt, %36, %47 : vector<4x16x4xf32>
    %49 = arith.select %48, %36, %46 : vector<4x16x4xi1>, vector<4x16x4xf32>
    %c0_28 = arith.constant 0 : index
    %50 = arith.index_cast %1 : i32 to index
    %c0_29 = arith.constant 0 : index
    %c0_30 = arith.constant 0 : index
    %51 = vector.load %arg2[%c0_28, %50, %c0_29, %c0_30] : memref<1x16x16x4xf32, #tpu.memory_space<vmem>>, vector<1x4x16x4xf32>
    %52 = vector.shape_cast %51 : vector<1x4x16x4xf32> to vector<4x16x4xf32>
    %53 = arith.addf %49, %52 : vector<4x16x4xf32>
    %c0_31 = arith.constant 0 : index
    %c0_32 = arith.constant 0 : index
    %c0_33 = arith.constant 0 : index
    %c0_34 = arith.constant 0 : index
    %54 = vector.load %arg7[%c0_31, %c0_32, %c0_33, %c0_34] : memref<1x4x16x4xf32, #tpu.memory_space<vmem>>, vector<1x4x16x4xf32>
    %55 = vector.shape_cast %54 : vector<1x4x16x4xf32> to vector<4x16x4xf32>
    %56 = vector.shape_cast %53 : vector<4x16x4xf32> to vector<1x4x16x4xf32>
    tpu.vector_store %arg7[%c0_31, %c0_32, %c0_33, %c0_34], %56 {strides = array<i32>} : memref<1x4x16x4xf32, #tpu.memory_space<vmem>>, vector<1x4x16x4xf32>,
    return
  }
  func.func @transform_0(%arg0: i32, %arg1: i32) -> (i32, i32, i32, i32) {
    %c0_i32 = arith.constant 0 : i32
    %c0_i32_0 = arith.constant 0 : i32
    %c0_i32_1 = arith.constant 0 : i32
    %c0_i32_2 = arith.constant 0 : i32
    return %arg0, %c0_i32, %c0_i32_0, %c0_i32_1 : i32, i32, i32, i32
  }
  func.func @transform_1(%arg0: i32, %arg1: i32) -> (i32, i32) {
    %c0_i32 = arith.constant 0 : i32
    %c0_i32_0 = arith.constant 0 : i32
    %c0_i32_1 = arith.constant 0 : i32
    return %c0_i32, %c0_i32_0 : i32, i32
  }
  func.func @transform_2(%arg0: i32, %arg1: i32) -> (i32, i32) {
    %c0_i32 = arith.constant 0 : i32
    %c0_i32_0 = arith.constant 0 : i32
    %c0_i32_1 = arith.constant 0 : i32
    return %c0_i32, %c0_i32_0 : i32, i32
  }
  func.func @transform_3(%arg0: i32, %arg1: i32) -> (i32, i32) {
    %c0_i32 = arith.constant 0 : i32
    %c0_i32_0 = arith.constant 0 : i32
    %c0_i32_1 = arith.constant 0 : i32
    return %c0_i32, %c0_i32_0 : i32, i32
  }
  func.func @transform_4(%arg0: i32, %arg1: i32) -> (i32, i32) {
    %c0_i32 = arith.constant 0 : i32
    %c0_i32_0 = arith.constant 0 : i32
    %c0_i32_1 = arith.constant 0 : i32
    return %c0_i32, %c0_i32_0 : i32, i32
  }
  func.func @transform_5(%arg0: i32, %arg1: i32) -> (i32, i32, i32, i32) {
    %c0_i32 = arith.constant 0 : i32
    %c0_i32_0 = arith.constant 0 : i32
    %c0_i32_1 = arith.constant 0 : i32
    return %arg0, %arg1, %c0_i32, %c0_i32_0 : i32, i32, i32, i32
  }
}

</mosaic_0001>

<bundles_post_ra>
// kernel: tpu_custom_call.1
= control target key start
LH: loop header
LB: loop body
LE: loop exit
PB: predicated region body
PF: predicated region fallthrough
CT: control target
= control target key end

     0   :  { %s2637_s18 = smov 0   ;;  %s2639_s19 = smov 0   ;;  %s3922_s0 = inlined_call_operand.vmem [shape: f32[2,16,16,4], index: 0, kind: input, shape index: {}]   ;;  %s3923_s1 = inlined_call_operand.vmem [shape: f32[4,4], index: 1, kind: input, shape index: {}]   ;;  %s3924_s2 = inlined_call_operand.vmem [shape: f32[36,4], index: 2, kind: input, shape index: {}]   ;;  %s3925_s3 = inlined_call_operand.vmem [shape: f32[1,4], index: 3, kind: input, shape index: {}]   ;;  %s3926_s4 = inlined_call_operand.vmem [shape: f32[1,4], index: 4, kind: input, shape index: {}]   ;;  %s3927_s5 = inlined_call_operand.vmem [shape: f32[2,16,16,4], index: 5, kind: output, shape index: {}]  }
   0x1   :  { %s2641_s20 = smov 0   ;;  %s2643_s21 = smov 0  }
   0x2   :  { %s2645_s22 = smov 0  }
   0x3 LB: > { %s24_s23 = sadd.s32 1, %s2586_s20  ;;  %s27_s24 = sadd.s32 1, %s2590_s21  ;;  %s2594_s22 = sphi %s2645_s22, %s15_s22   ;;  %s2590_s21 = sphi %s2643_s21, %s3961_s21   ;;  %s2586_s20 = sphi %s2641_s20, %s3960_s20   ;;  %s2582_s19 = sphi %s2639_s19, %s3959_s19   ;;  %s2578_s18 = sphi %s2637_s18, %s3958_s18  }
   0x4   : > { %p25_p0 = scmp.ge.s32.totalorder %s24_s23, 4  ;;  %p2254_p1 = scmp.ge.s32.totalorder %s2594_s22, 1 }
   0x5   : > { %p201_p2 = scmp.lt.s32.totalorder %s2594_s22, 9 }
   0x6   : > { %s3963_s23 = smov (%p25_p0, %s24_s23), 0  ;;  %s3965_s24 = smov (!%p25_p0, %s27_s24), %s2590_s21 }
   0x7   : > { %p202_p3 = pnand %p2254_p1, %p201_p2  ;;  %p29_p4 = scmp.ge.s32.totalorder %s3965_s24, 2 }
   0x8   : > { %p234_p5 = scmp.lt.s32.totalorder (!%p202_p3), %s2582_s19, 1  ;;  %s2670_s25 = sshll.u32 (!%p202_p3), %s2578_s18, 2 }
   0x9   : > { %s3967_s24 = smov (%p29_p4, %s3965_s24), 0  ;;  %205 = sbr.rel (%p202_p3) target bundleno = 1146 (0x47a), region = 40 }
   0xa   : > { %p242_p6 = scmp.lt.s32.totalorder (!%p202_p3), %s2670_s25, 15  ;;  %p265_p7 = scmp.gt.s32.totalorder (!%p202_p3), %s2578_s18, 0 }
   0xb   : > { %p266_p8 = scmp.lt.s32.totalorder (!%p202_p3), %s2578_s18, 3 }
   0xd   : > { %p267_p9 = pnand (!%p202_p3), %p266_p8, %p265_p7 }
   0xe   : > { %v2675_v0 = vld [vmem:[%s3923_s1] sm:$0xf]  ;;  %vm252_vm0 = vcmask 24576   ;;  %v2596_v1 = vmov 0.0   ;;  %s3969_s19 = smov (!%p234_p5, %s2582_s19), 1  ;;  %s2262_s15 = sadd.s32 (!%p267_p9), 4294967295, %s2670_s25 }
   0xf   : > { %253 = vst.msk [vmem:[#allocation2] sm:$0x1] %vm252_vm0, %v2596_v1  ;;  %s243_s28 = scalar_select %p242_p6, %s2670_s25, 15 }
  0x10   : > { %254 = vst.msk [vmem:[#allocation2 + $0x18] sm:$0x1] %vm252_vm0, %v2596_v1  ;;  %s2315_s29 = sshll.u32 %s3969_s19, 8  ;;  %s2259_s30 = sshll.u32 %s3969_s19, 5 }
  0x11   : > { %255 = vst.msk [vmem:[#allocation2 + $0x30] sm:$0x1] %vm252_vm0, %v2596_v1  ;;  %s2687_s8 = scalar_lea.vmem %s3922_s0, %s2315_s29  ;;  %s2258_s9 = sshll.u32 %s243_s28, 1 }
  0x12   : > { %256 = vst.msk [vmem:[#allocation2 + $0x48] sm:$0x1] %vm252_vm0, %v2596_v1  ;;  %s246_s10 = sadd.s32 %s2259_s30, %s2258_s9  ;;  %s2263_s16 = sshll.u32 (!%p267_p9), %s2262_s15, 4 }
  0x13   : > { %257 = vst.msk [vmem:[#allocation2 + $0x60] sm:$0x1] %vm252_vm0, %v2596_v1  ;;  %s2260_s11 = sshll.u32 %s246_s10, 3  ;;  %s273_s17 = scalar_lea.vmem (!%p267_p9), %s2687_s8, %s2263_s16 }
  0x14   : > { %258 = vst.msk [vmem:[#allocation2 + $0x78] sm:$0x1] %vm252_vm0, %v2596_v1  ;;  %s2696_s14 = scalar_lea.vmem %s3927_s5, %s2260_s11 }
  0x15   : > { %259 = vst.msk [vmem:[#allocation2 + $0x11] sm:$0x1] %vm252_vm0, %v2596_v1 }
  0x16   : > { %260 = vst.msk [vmem:[#allocation2 + $0x29] sm:$0x1] %vm252_vm0, %v2596_v1  ;;  %270 = sbr.rel (%p267_p9) target bundleno = 246 (0xf6), region = 44 }
  0x17   : > { %261 = vst.msk [vmem:[#allocation2 + $0x41] sm:$0x1] %vm252_vm0, %v2596_v1 }
  0x18   : > { %262 = vst.msk [vmem:[#allocation2 + $0x59] sm:$0x1] %vm252_vm0, %v2596_v1 }
  0x19   : > { %263 = vst.msk [vmem:[#allocation2 + $0x71] sm:$0x1] %vm252_vm0, %v2596_v1 }
  0x1a   : > { %264 = vst.msk [vmem:[#allocation2 + $0x89] sm:$0x1] %vm252_vm0, %v2596_v1 }
  0x1b   : > { %vm327_vm1 = vcmask 1043456   ;;  %vm290_vm2 = vcmask 31744   ;;  %v274_v2 = vld [vmem:[%s273_s17] sm:$0xff]  ;;  %v277_v3 = vld [vmem:[%s273_s17 + $0x18] sm:$0xff]  ;;  %v280_v4 = vld [vmem:[%s273_s17 + $0x30] sm:$0xff] }
  0x1c   : > { %2264 = vmatpush.msk.msra.mxu0 %vm327_vm1, %v2675_v0  ;;  %2317 = vmatpush.msk.msra.mxu1 %vm327_vm1, %v2675_v0  ;;  %v283_v5 = vld [vmem:[%s273_s17 + $0x48] sm:$0xff]  ;;  %v278_v7 = vld [vmem:[%s273_s17 + $0x20] sm:$0xff]  ;;  %v281_v8 = vld [vmem:[%s273_s17 + $0x38] sm:$0xff] }
  0x1d   : > { %2318 = vmatpush.msk.msra.mxu2 %vm327_vm1, %v2675_v0  ;;  %2319 = vmatpush.msk.msra.mxu3 %vm327_vm1, %v2675_v0  ;;  %v275_v6 = vld [vmem:[%s273_s17 + $0x8] sm:$0xff]  ;;  %v284_v9 = vld [vmem:[%s273_s17 + $0x50] sm:$0xff]  ;;  %v282_v12 = vld [vmem:[%s273_s17 + $0x40] sm:$0xff] }
  0x1e   : > { %2265 = vmatmul.msk.f32.vlgmr.msra.gmra.mxu0 %vm290_vm2, %v274_v2  ;;  %2268 = vmatmul.msk.f32.vlgmr.msra.gmra.mxu1 %vm290_vm2, %v277_v3  ;;  %v276_v10 = vld [vmem:[%s273_s17 + $0x10] sm:$0xff]  ;;  %v279_v11 = vld [vmem:[%s273_s17 + $0x28] sm:$0xff]  ;;  %v285_v13 = vld [vmem:[%s273_s17 + $0x58] sm:$0xff] }
  0x1f   : > { %2271 = vmatmul.msk.f32.vlgmr.msra.gmra.mxu2 %vm290_vm2, %v280_v4  ;;  %2274 = vmatmul.msk.f32.vlgmr.msra.gmra.mxu3 %vm290_vm2, %v283_v5  ;;  %v2726_v14 = vld [vmem:[%s3925_s3] ss:$0 sm:$0xff] }
  0x26   : > { %2266 = vmatmul.msk.f32.gmra.mxu0 %vm290_vm2, %v275_v6  ;;  %2269 = vmatmul.msk.f32.gmra.mxu1 %vm290_vm2, %v278_v7 }
  0x27   : > { %2272 = vmatmul.msk.f32.gmra.mxu2 %vm290_vm2, %v281_v8  ;;  %2275 = vmatmul.msk.f32.gmra.mxu3 %vm290_vm2, %v284_v9 }
  0x2e   : > { %2267 = vmatmul.msk.f32.gmra.mxu0 %vm290_vm2, %v276_v10  ;;  %2270 = vmatmul.msk.f32.gmra.mxu1 %vm290_vm2, %v279_v11 }
  0x2f   : > { %2273 = vmatmul.msk.f32.gmra.mxu2 %vm290_vm2, %v282_v12  ;;  %2276 = vmatmul.msk.f32.gmra.mxu3 %vm290_vm2, %v285_v13 }
  0x9b   : > { %v348_v15 = vpop.f32.mrf.mxu0  ;;  %v357_v16 = vpop.f32.mrf.mxu1 }
  0x9c   : > { %v2729_v17 = vadd.f32 %v2726_v14, %v348_v15  ;;  %v2732_v18 = vadd.f32 %v2726_v14, %v357_v16 }
  0x9e   : > { %v384_v19 = vmin.f32 %v2729_v17, 20.0  ;;  %v387_v20 = vmin.f32 %v2732_v18, 20.0  ;;  %vm648_vm8 = vcmp.gt.f32.partialorder %v2729_v17, 20.0  ;;  %vm651_vm9 = vcmp.gt.f32.partialorder %v2732_v18, 20.0 }
  0xa0   : > { %v396_v21 = vmul.f32 1.442695, %v384_v19  ;;  %v402_v22 = vmul.f32 1.442695, %v387_v20 }
  0xa2   : > { %2393 = vpow2.f32 %v396_v21  ;;  %v366_v23 = vpop.f32.mrf.mxu2  ;;  %v375_v24 = vpop.f32.mrf.mxu3 }
  0xa3   : > { %2395 = vpow2.f32 %v402_v22  ;;  %v2737_v25 = vadd.f32 %v2726_v14, %v366_v23  ;;  %v2740_v26 = vadd.f32 %v2726_v14, %v375_v24  ;;  %v351_v27 = vpop.f32.mrf.mxu0  ;;  %v360_v28 = vpop.f32.mrf.mxu1 }
  0xa4   : > { %v2743_v29 = vadd.f32 %v2726_v14, %v351_v27  ;;  %v2746_v30 = vadd.f32 %v2726_v14, %v360_v28 }
  0xa5   : > { %v390_v31 = vmin.f32 %v2737_v25, 20.0  ;;  %v393_v32 = vmin.f32 %v2740_v26, 20.0 }
  0xa6   : > { %v385_v33 = vmin.f32 %v2743_v29, 20.0  ;;  %v388_v34 = vmin.f32 %v2746_v30, 20.0 }
  0xa7   : > { %v408_v35 = vmul.f32 1.442695, %v390_v31  ;;  %v414_v36 = vmul.f32 1.442695, %v393_v32 }
  0xa8   : > { %v2394_v37 = vpop.eup %2393  ;;  %v398_v38 = vmul.f32 1.442695, %v385_v33  ;;  %v404_v42 = vmul.f32 1.442695, %v388_v34 }
  0xa9   : > { %v2396_v39 = vpop.eup %2395  ;;  %v420_v40 = vadd.f32 2.0, %v2394_v37  ;;  %2397 = vpow2.f32 %v408_v35 }
  0xaa   : > { %v423_v41 = vadd.f32 2.0, %v2396_v39  ;;  %2399 = vpow2.f32 %v414_v36  ;;  %v369_v43 = vpop.f32.mrf.mxu2  ;;  %v378_v50 = vpop.f32.mrf.mxu3 }
  0xab   : > { %v432_v44 = vmul.f32 %v2394_v37, %v420_v40  ;;  %2401 = vpow2.f32 %v398_v38  ;;  %v2753_v45 = vadd.f32 %v2726_v14, %v369_v43  ;;  %v354_v51 = vpop.f32.mrf.mxu0  ;;  %v363_v53 = vpop.f32.mrf.mxu1  ;;  %v2763_v58 = vadd.f32 %v2726_v14, %v378_v50 }
  0xac   : > { %v435_v46 = vmul.f32 %v2396_v39, %v423_v41  ;;  %2403 = vpow2.f32 %v404_v42  ;;  %v2766_v59 = vadd.f32 %v2726_v14, %v354_v51  ;;  %v2772_v63 = vadd.f32 %v2726_v14, %v363_v53 }
  0xad   : > { %v2755_v47 = vadd.f32 2.0, %v432_v44  ;;  %v391_v49 = vmin.f32 %v2753_v45, 20.0  ;;  %v2769_v60 = vmul.f32 %v432_v44, %v2729_v17  ;;  %v394_v13 = vmin.f32 %v2763_v58, 20.0 }
  0xae   : > { %v2757_v48 = vadd.f32 2.0, %v435_v46  ;;  %v2777_v6 = vmul.f32 %v435_v46, %v2732_v18  ;;  %v386_v38 = vmin.f32 %v2766_v59, 20.0 }
  0xaf   : > { %v2398_v52 = vpop.eup %2397  ;;  %2405 = vrcp.f32 %v2755_v47  ;;  %v410_v62 = vmul.f32 1.442695, %v391_v49  ;;  %v477_v1 = vand.u32 2147483647, %v2755_v47  ;;  %v479_v2 = vand.u32 2147483648, %v2755_v47 }
  0xb0   : > { %v2400_v54 = vpop.eup %2399  ;;  %2407 = vrcp.f32 %v2757_v48  ;;  %v426_v56 = vadd.f32 2.0, %v2398_v52  ;;  %v522_v7 = vand.u32 2147483647, %v2757_v48  ;;  %v524_v8 = vand.u32 2147483648, %v2757_v48 }
  0xb1   : > { %v2402_v55 = vpop.eup %2401  ;;  %v429_v57 = vadd.f32 2.0, %v2400_v54  ;;  %vm473_vm3 = vweird.f32 %v2755_v47  ;;  %vm518_vm4 = vweird.f32 %v2757_v48  ;;  %2409 = vpow2.f32 %v410_v62 }
  0xb2   : > { %v421_v61 = vadd.f32 2.0, %v2402_v55  ;;  %v438_v3 = vmul.f32 %v2398_v52, %v426_v56  ;;  %v2404_v5 = vpop.eup %2403  ;;  %vm2794_vm5 = vcmp.eq.f32.partialorder %v477_v1, 8.507059e+37  ;;  %v480_v21 = vor.u32 1.1754944e-38, %v479_v2  ;;  %v381_v52 = vpop.f32.mrf.mxu3 }
  0xb3   : > { %v441_v4 = vmul.f32 %v2400_v54, %v429_v57  ;;  %vm2800_vm6 = vcmp.eq.f32.partialorder %v522_v7, 8.507059e+37  ;;  %v525_v27 = vor.u32 1.1754944e-38, %v524_v8  ;;  %v424_v31 = vadd.f32 2.0, %v2404_v5 }
  0xb4   : > { %v2781_v9 = vmul.f32 %v2402_v55, %v421_v61  ;;  %v2784_v11 = vadd.f32 2.0, %v438_v3  ;;  %v416_v32 = vmul.f32 1.442695, %v394_v13  ;;  %v2811_v37 = vmul.f32 %v438_v3, %v2737_v25 }
  0xb5   : > { %v2406_v10 = vpop.eup %2405  ;;  %v2786_v12 = vadd.f32 2.0, %v441_v4  ;;  %v2816_v41 = vmul.f32 %v441_v4, %v2740_v26  ;;  %v2832_v53 = vmul.f32 %v2404_v5, %v424_v31  ;;  %v400_v31 = vmul.f32 1.442695, %v386_v38 }
  0xb6   : > { %v2408_v15 = vpop.eup %2407  ;;  %v469_v16 = vmul.f32 %v2406_v10, %v2755_v47  ;;  %v2792_v19 = vadd.f32 2.0, %v2781_v9  ;;  %2411 = vrcp.f32 %v2784_v11  ;;  %vm474_vm7 = vweird.f32 %v2406_v10 }
  0xb7   : > { %v514_v22 = vmul.f32 %v2408_v15, %v2757_v48  ;;  %2413 = vrcp.f32 %v2786_v12  ;;  %v567_v34 = vand.u32 2147483647, %v2784_v11  ;;  %v569_v35 = vand.u32 2147483648, %v2784_v11  ;;  %v2410_v39 = vpop.eup %2409  ;;  %vm475_vm12 = vmor %vm473_vm3, %vm474_vm7 }
  0xb8   : > { %v470_v23 = vsub.f32 1.0, %v469_v16  ;;  %2415 = vrcp.f32 %v2792_v19  ;;  %vm519_vm10 = vweird.f32 %v2408_v15  ;;  %vm563_vm11 = vweird.f32 %v2784_v11 }
  0xb9   : > { %v515_v28 = vsub.f32 1.0, %v514_v22  ;;  %v612_v42 = vand.u32 2147483647, %v2786_v12  ;;  %vm608_vm13 = vweird.f32 %v2786_v12  ;;  %v614_v46 = vand.u32 2147483648, %v2786_v12  ;;  %vm520_vm14 = vmor %vm518_vm4, %vm519_vm10 }
  0xba   : > { %v471_v33 = vmul.f32 %v2406_v10, %v470_v23  ;;  %2417 = vpow2.f32 %v416_v32  ;;  %vm2828_vm15 = vcmp.eq.f32.partialorder %v567_v34, 8.507059e+37  ;;  %v570_v47 = vor.u32 1.1754944e-38, %v569_v35 }
  0xbb   : > { %v516_v36 = vmul.f32 %v2408_v15, %v515_v28  ;;  %v427_v57 = vadd.f32 2.0, %v2410_v39  ;;  %vm2840_vm0 = vcmp.eq.f32.partialorder %v612_v42, 8.507059e+37  ;;  %vm654_vm3 = vcmp.gt.f32.partialorder %v2737_v25, 20.0 }
  0xbc   : > { %v472_v40 = vadd.f32 %v2406_v10, %v471_v33  ;;  %v2412_v43 = vpop.eup %2411  ;;  %v2852_v8 = vadd.f32 2.0, %v2832_v53  ;;  %v615_v20 = vor.u32 1.1754944e-38, %v614_v46  ;;  %v445_v38 = vmul.f32 %v2781_v9, %v2743_v29 }
  0xbd   : > { %v517_v44 = vadd.f32 %v2408_v15, %v516_v36  ;;  %v2414_v49 = vpop.eup %2413  ;;  %v559_v51 = vmul.f32 %v2412_v43, %v2784_v11  ;;  %vm564_vm1 = vweird.f32 %v2412_v43  ;;  %v2858_v16 = vmul.f32 %v2410_v39, %v427_v57 }
  0xbe   : > { %v476_v50 = vsel %vm475_vm12, %v2406_v10, %v472_v40  ;;  %v604_v56 = vmul.f32 %v2414_v49, %v2786_v12  ;;  %v2416_v61 = vpop.eup %2415  ;;  %vm609_vm4 = vweird.f32 %v2414_v49  ;;  %2419 = vrcp.f32 %v2852_v8 }
  0xbf   : > { %v481_v54 = vsel %vm2794_vm5, %v480_v21, %v476_v50  ;;  %v521_v55 = vsel %vm520_vm14, %v2408_v15, %v517_v44  ;;  %v560_v1 = vsub.f32 1.0, %v559_v51  ;;  %v484_v5 = vmul.f32 %v2416_v61, %v2792_v19 }
  0xc0   : > { %v482_v48 = vmul.f32 %v481_v54, %v2769_v60  ;;  %v526_v62 = vsel %vm2800_vm6, %v525_v27, %v521_v55  ;;  %v605_v4 = vsub.f32 1.0, %v604_v56  ;;  %vm657_vm5 = vcmp.gt.f32.partialorder %v2740_v26, 20.0  ;;  %v2418_v10 = vpop.eup %2417  ;;  %vm565_vm6 = vmor %vm563_vm11, %vm564_vm1 }
  0xc1   : > { %v527_v3 = vmul.f32 %v526_v62, %v2777_v6  ;;  %v561_v7 = vmul.f32 %v2412_v43, %v560_v1  ;;  %v485_v15 = vsub.f32 1.0, %v484_v5  ;;  %v494_v21 = vand.u32 2147483648, %v2792_v19 }
  0xc2   : > { %v660_v60 = vsel %vm648_vm8, %v2729_v17, %v482_v48  ;;  %v606_v13 = vmul.f32 %v2414_v49, %v605_v4  ;;  %vm489_vm7 = vweird.f32 %v2416_v61  ;;  %vm610_vm8 = vmor %vm608_vm13, %vm609_vm4  ;;  %v2871_v27 = vadd.f32 2.0, %v2858_v16 }
  0xc3   : > { %672 = vst.msk [vmem:[#allocation2 + $0x1] sm:$0xff] %vm290_vm2, %v660_v60  ;;  %v663_v6 = vsel %vm651_vm9, %v2732_v18, %v527_v3  ;;  %v562_v17 = vadd.f32 %v2412_v43, %v561_v7  ;;  %v486_v23 = vmul.f32 %v2416_v61, %v485_v15  ;;  %v492_v18 = vand.u32 2147483647, %v2792_v19 }
  0xc4   : > { %675 = vst.msk [vmem:[#allocation2 + $0x21] sm:$0xff] %vm290_vm2, %v663_v6  ;;  %v607_v22 = vadd.f32 %v2414_v49, %v606_v13  ;;  %v430_v28 = vadd.f32 2.0, %v2418_v10  ;;  %vm488_vm9 = vweird.f32 %v2792_v19  ;;  %v495_v12 = vor.u32 1.1754944e-38, %v494_v21  ;;  %v2420_v40 = vpop.eup %2419 }
  0xc5   : > { %v566_v24 = vsel %vm565_vm6, %v2412_v43, %v562_v17  ;;  %v487_v33 = vadd.f32 %v2416_v61, %v486_v23  ;;  %vm490_vm10 = vmor %vm488_vm9, %vm489_vm7  ;;  %2421 = vrcp.f32 %v2871_v27  ;;  %vm493_vm11 = vcmp.eq.f32.partialorder %v492_v18, 8.507059e+37 }
  0xc6   : > { %v571_v32 = vsel %vm2828_vm15, %v570_v47, %v566_v24  ;;  %v611_v11 = vsel %vm610_vm8, %v2414_v49, %v607_v22  ;;  %v2886_v42 = vmul.f32 %v2418_v10, %v430_v28  ;;  %2423 = vpow2.f32 %v400_v31 }
  0xc7   : > { %v572_v34 = vmul.f32 %v571_v32, %v2811_v37  ;;  %v616_v35 = vsel %vm2840_vm0, %v615_v20, %v611_v11  ;;  %v491_v39 = vsel %vm490_vm10, %v2416_v61, %v487_v33  ;;  %v529_v9 = vmul.f32 %v2420_v40, %v2852_v8 }
  0xc8   : > { %v617_v36 = vmul.f32 %v616_v35, %v2816_v41  ;;  %v496_v37 = vsel %vm493_vm11, %v495_v12, %v491_v39  ;;  %vm649_vm12 = vcmp.gt.f32.partialorder %v2743_v29, 20.0  ;;  %v537_v44 = vand.u32 2147483647, %v2852_v8 }
  0xc9   : > { %v666_v19 = vsel %vm654_vm3, %v2737_v25, %v572_v34  ;;  %v497_v43 = vmul.f32 %v496_v37, %v445_v38  ;;  %v539_v25 = vand.u32 2147483648, %v2852_v8  ;;  %v2898_v46 = vadd.f32 2.0, %v2886_v42 }
  0xca   : > { %678 = vst.msk [vmem:[#allocation2 + $0x49] sm:$0xff] %vm290_vm2, %v666_v19  ;;  %v669_v41 = vsel %vm657_vm5, %v2740_v26, %v617_v36  ;;  %v530_v50 = vsub.f32 1.0, %v529_v9  ;;  %v389_v51 = vmin.f32 %v2772_v63, 20.0  ;;  %v372_v26 = vpop.f32.mrf.mxu2  ;;  %v448_v54 = vmul.f32 %v2832_v53, %v2746_v30 }
  0xcb   : > { %681 = vst.msk [vmem:[#allocation2 + $0x69] sm:$0xff] %vm290_vm2, %v669_v41  ;;  %v661_v49 = vsel %vm649_vm12, %v2743_v29, %v497_v43  ;;  %v2422_v47 = vpop.eup %2421  ;;  %vm533_vm13 = vweird.f32 %v2852_v8  ;;  %vm652_vm14 = vcmp.gt.f32.partialorder %v2746_v30, 20.0  ;;  %2425 = vrcp.f32 %v2898_v46 }
  0xcc   : > { %673 = vst.msk [vmem:[#allocation2 + $0x9] sm:$0xff] %vm290_vm2, %v661_v49  ;;  %v531_v55 = vmul.f32 %v2420_v40, %v530_v50  ;;  %vm534_vm15 = vweird.f32 %v2420_v40  ;;  %v574_v29 = vmul.f32 %v2422_v47, %v2871_v27  ;;  %v406_v56 = vmul.f32 1.442695, %v389_v51  ;;  %v2424_v57 = vpop.eup %2423 }
  0xcd   : > { %vm2909_vm0 = vcmp.eq.f32.partialorder %v537_v44, 8.507059e+37  ;;  %v540_v48 = vor.u32 1.1754944e-38, %v539_v25  ;;  %v2914_v62 = vadd.f32 %v2726_v14, %v372_v26  ;;  %v2917_v53 = vadd.f32 %v2726_v14, %v381_v52  ;;  %vm535_vm1 = vmor %vm533_vm13, %vm534_vm15 }
  0xce   : > { %v532_v1 = vadd.f32 %v2420_v40, %v531_v55  ;;  %v575_v2 = vsub.f32 1.0, %v574_v29  ;;  %v422_v3 = vadd.f32 2.0, %v2424_v57  ;;  %2427 = vpow2.f32 %v406_v56 }
  0xcf   : > { %v582_v4 = vand.u32 2147483647, %v2871_v27  ;;  %v584_v5 = vand.u32 2147483648, %v2871_v27  ;;  %v392_v60 = vmin.f32 %v2914_v62, 20.0  ;;  %v395_v7 = vmin.f32 %v2917_v53, 20.0 }
  0xd0   : > { %v536_v10 = vsel %vm535_vm1, %v2420_v40, %v532_v1  ;;  %v576_v6 = vmul.f32 %v2422_v47, %v575_v2  ;;  %vm579_vm3 = vweird.f32 %v2422_v47  ;;  %v2925_v14 = vmul.f32 %v2424_v57, %v422_v3 }
  0xd1   : > { %v2426_v13 = vpop.eup %2425  ;;  %v541_v15 = vsel %vm2909_vm0, %v540_v48, %v536_v10  ;;  %v451_v8 = vmul.f32 %v2858_v16, %v2753_v45  ;;  %v412_v17 = vmul.f32 1.442695, %v392_v60  ;;  %v418_v20 = vmul.f32 1.442695, %v395_v7 }
  0xd2   : > { %v542_v21 = vmul.f32 %v541_v15, %v448_v54  ;;  %v577_v22 = vadd.f32 %v2422_v47, %v576_v6  ;;  %vm578_vm4 = vweird.f32 %v2871_v27  ;;  %v619_v23 = vmul.f32 %v2426_v13, %v2898_v46 }
  0xd3   : > { %vm580_vm5 = vmor %vm578_vm4, %vm579_vm3  ;;  %vm583_vm6 = vcmp.eq.f32.partialorder %v582_v4, 8.507059e+37  ;;  %v585_v18 = vor.u32 1.1754944e-38, %v584_v5  ;;  %v458_v24 = vadd.f32 2.0, %v2925_v14  ;;  %2429 = vpow2.f32 %v412_v17 }
  0xd4   : > { %v2428_v28 = vpop.eup %2427  ;;  %v664_v31 = vsel %vm652_vm14, %v2746_v30, %v542_v21  ;;  %v581_v16 = vsel %vm580_vm5, %v2422_v47, %v577_v22  ;;  %v620_v32 = vsub.f32 1.0, %v619_v23  ;;  %2431 = vpow2.f32 %v418_v20 }
  0xd5   : > { %676 = vst.msk [vmem:[#allocation2 + $0x31] sm:$0xff] %vm290_vm2, %v664_v31  ;;  %v586_v11 = vsel %vm583_vm6, %v585_v18, %v581_v16  ;;  %v627_v27 = vand.u32 2147483647, %v2898_v46  ;;  %v629_v33 = vand.u32 2147483648, %v2898_v46  ;;  %2433 = vrcp.f32 %v458_v24 }
  0xd6   : > { %v587_v34 = vmul.f32 %v586_v11, %v451_v8  ;;  %v621_v35 = vmul.f32 %v2426_v13, %v620_v32  ;;  %vm624_vm7 = vweird.f32 %v2426_v13  ;;  %v425_v12 = vadd.f32 2.0, %v2428_v28 }
  0xd7   : > { %vm655_vm8 = vcmp.gt.f32.partialorder %v2753_v45, 20.0  ;;  %vm623_vm9 = vweird.f32 %v2898_v46  ;;  %v454_v40 = vmul.f32 %v2886_v42, %v2763_v58  ;;  %v630_v19 = vor.u32 1.1754944e-38, %v629_v33 }
  0xd8   : > { %v667_v36 = vsel %vm655_vm8, %v2753_v45, %v587_v34  ;;  %v622_v30 = vadd.f32 %v2426_v13, %v621_v35  ;;  %v437_v38 = vmul.f32 %v2428_v28, %v425_v12  ;;  %vm625_vm10 = vmor %vm623_vm9, %vm624_vm7  ;;  %vm628_vm11 = vcmp.eq.f32.partialorder %v627_v27, 8.507059e+37 }
  0xd9   : > { %v2430_v39 = vpop.eup %2429  ;;  %679 = vst.msk [vmem:[#allocation2 + $0x51] sm:$0xff] %vm290_vm2, %v667_v36  ;;  %vm658_vm12 = vcmp.gt.f32.partialorder %v2763_v58, 20.0  ;;  %v509_v52 = vand.u32 2147483648, %v458_v24  ;;  %v507_v55 = vand.u32 2147483647, %v458_v24  ;;  %vm503_vm14 = vweird.f32 %v458_v24 }
  0xda   : > { %v2432_v37 = vpop.eup %2431  ;;  %v626_v41 = vsel %vm625_vm10, %v2426_v13, %v622_v30  ;;  %v461_v43 = vadd.f32 2.0, %v437_v38  ;;  %v428_v9 = vadd.f32 2.0, %v2430_v39  ;;  %v446_v48 = vmul.f32 %v2925_v14, %v2766_v59 }
  0xdb   : > { %v2434_v44 = vpop.eup %2433  ;;  %v631_v25 = vsel %vm628_vm11, %v630_v19, %v626_v41  ;;  %v431_v45 = vadd.f32 2.0, %v2432_v37  ;;  %vm508_vm0 = vcmp.eq.f32.partialorder %v507_v55, 8.507059e+37  ;;  %vm650_vm1 = vcmp.gt.f32.partialorder %v2766_v59, 20.0 }
  0xdc   : > { %v632_v49 = vmul.f32 %v631_v25, %v454_v40  ;;  %v499_v50 = vmul.f32 %v2434_v44, %v458_v24  ;;  %2435 = vrcp.f32 %v461_v43  ;;  %v2947_v46 = vmul.f32 %v2430_v39, %v428_v9 }
  0xdd   : > { %v2950_v26 = vmul.f32 %v2432_v37, %v431_v45  ;;  %vm504_vm13 = vweird.f32 %v2434_v44  ;;  %v552_v5 = vand.u32 2147483647, %v461_v43  ;;  %v554_v60 = vand.u32 2147483648, %v461_v43 }
  0xde   : > { %v670_v51 = vsel %vm658_vm12, %v2763_v58, %v632_v49  ;;  %v500_v42 = vsub.f32 1.0, %v499_v50  ;;  %v464_v47 = vadd.f32 2.0, %v2947_v46  ;;  %vm505_vm15 = vmor %vm503_vm14, %vm504_vm13  ;;  %v510_v58 = vor.u32 1.1754944e-38, %v509_v52 }
  0xdf   : > { %682 = vst.msk [vmem:[#allocation2 + $0x79] sm:$0xff] %vm290_vm2, %v670_v51  ;;  %v2955_v29 = vadd.f32 2.0, %v2950_v26  ;;  %vm548_vm4 = vweird.f32 %v461_v43  ;;  %v449_v17 = vmul.f32 %v437_v38, %v2772_v63  ;;  %vm553_vm6 = vcmp.eq.f32.partialorder %v552_v5, 8.507059e+37 }
  0xe0   : > { %v501_v54 = vmul.f32 %v2434_v44, %v500_v42  ;;  %2437 = vrcp.f32 %v464_v47  ;;  %v555_v20 = vor.u32 1.1754944e-38, %v554_v60  ;;  %v597_v23 = vand.u32 2147483647, %v464_v47 }
  0xe1   : > { %2439 = vrcp.f32 %v2955_v29  ;;  %v599_v18 = vand.u32 2147483648, %v464_v47  ;;  %v642_v11 = vand.u32 2147483647, %v2955_v29  ;;  %vm653_vm9 = vcmp.gt.f32.partialorder %v2772_v63, 20.0 }
  0xe2   : > { %v2436_v56 = vpop.eup %2435  ;;  %v502_v57 = vadd.f32 %v2434_v44, %v501_v54  ;;  %vm593_vm10 = vweird.f32 %v464_v47  ;;  %vm638_vm12 = vweird.f32 %v2955_v29  ;;  %v452_v12 = vmul.f32 %v2947_v46, %v2914_v62 }
  0xe3   : > { %v544_v61 = vmul.f32 %v2436_v56, %v461_v43  ;;  %vm549_vm3 = vweird.f32 %v2436_v56  ;;  %v600_v34 = vor.u32 1.1754944e-38, %v599_v18  ;;  %vm598_vm13 = vcmp.eq.f32.partialorder %v597_v23, 8.507059e+37 }
  0xe4   : > { %v506_v1 = vsel %vm505_vm15, %v2434_v44, %v502_v57  ;;  %vm550_vm5 = vmor %vm548_vm4, %vm549_vm3  ;;  %v455_v39 = vmul.f32 %v2950_v26, %v2917_v53  ;;  %vm643_vm15 = vcmp.eq.f32.partialorder %v642_v11, 8.507059e+37 }
  0xe5   : > { %v511_v2 = vsel %vm508_vm0, %v510_v58, %v506_v1  ;;  %v545_v3 = vsub.f32 1.0, %v544_v61  ;;  %vm656_vm0 = vcmp.gt.f32.partialorder %v2914_v62, 20.0 }
  0xe6   : > { %v512_v4 = vmul.f32 %v511_v2, %v446_v48  ;;  %v2438_v7 = vpop.eup %2437 }
  0xe7   : > { %v546_v10 = vmul.f32 %v2436_v56, %v545_v3  ;;  %v2440_v6 = vpop.eup %2439  ;;  %v589_v15 = vmul.f32 %v2438_v7, %v464_v47  ;;  %vm594_vm7 = vweird.f32 %v2438_v7 }
  0xe8   : > { %v662_v13 = vsel %vm650_vm1, %v2766_v59, %v512_v4  ;;  %v634_v14 = vmul.f32 %v2440_v6, %v2955_v29  ;;  %v644_v59 = vand.u32 2147483648, %v2955_v29  ;;  %vm639_vm8 = vweird.f32 %v2440_v6  ;;  %vm595_vm11 = vmor %vm593_vm10, %vm594_vm7 }
  0xe9   : > { %674 = vst.msk [vmem:[#allocation2 + $0x19] sm:$0xff] %vm290_vm2, %v662_v13  ;;  %v547_v8 = vadd.f32 %v2436_v56, %v546_v10  ;;  %v590_v21 = vsub.f32 1.0, %v589_v15  ;;  %vm640_vm14 = vmor %vm638_vm12, %vm639_vm8  ;;  %vm659_vm1 = vcmp.gt.f32.partialorder %v2917_v53, 20.0 }
  0xea   : > { %v635_v24 = vsub.f32 1.0, %v634_v14  ;;  %v645_v30 = vor.u32 1.1754944e-38, %v644_v59 }
  0xeb   : > { %v551_v22 = vsel %vm550_vm5, %v2436_v56, %v547_v8  ;;  %v591_v31 = vmul.f32 %v2438_v7, %v590_v21 }
  0xec   : > { %v556_v28 = vsel %vm553_vm6, %v555_v20, %v551_v22  ;;  %v636_v32 = vmul.f32 %v2440_v6, %v635_v24 }
  0xed   : > { %v557_v16 = vmul.f32 %v556_v28, %v449_v17  ;;  %v592_v27 = vadd.f32 %v2438_v7, %v591_v31 }
  0xee   : > { %v637_v35 = vadd.f32 %v2440_v6, %v636_v32 }
  0xef   : > { %v665_v33 = vsel %vm653_vm9, %v2772_v63, %v557_v16  ;;  %v596_v36 = vsel %vm595_vm11, %v2438_v7, %v592_v27 }
  0xf0   : > { %677 = vst.msk [vmem:[#allocation2 + $0x39] sm:$0xff] %vm290_vm2, %v665_v33  ;;  %v601_v38 = vsel %vm598_vm13, %v600_v34, %v596_v36  ;;  %v641_v40 = vsel %vm640_vm14, %v2440_v6, %v637_v35 }
  0xf1   : > { %v602_v63 = vmul.f32 %v601_v38, %v452_v12  ;;  %v646_v19 = vsel %vm643_vm15, %v645_v30, %v641_v40 }
  0xf2   : > { %v647_v37 = vmul.f32 %v646_v19, %v455_v39 }
  0xf3   : > { %v668_v41 = vsel %vm656_vm0, %v2914_v62, %v602_v63 }
  0xf4   : > { %680 = vst.msk [vmem:[#allocation2 + $0x61] sm:$0xff] %vm290_vm2, %v668_v41  ;;  %v671_v43 = vsel %vm659_vm1, %v2917_v53, %v647_v37 }
  0xf5   : > { %683 = vst.msk [vmem:[#allocation2 + $0x81] sm:$0xff] %vm290_vm2, %v671_v43 }
  0xf6 PF: > { %p2277_p10 = scmp.ne.s32.totalorder %s2578_s18, 0 }
  0xf8   : > { %687 = sbr.rel (%p2277_p10) target bundleno = 468 (0x1d4), region = 48 }
  0xfd   : > { %vm733_vm3 = vcmask 1043456   ;;  %v688_v9 = vld [vmem:[%s2687_s8] sm:$0xff]  ;;  %vm702_vm4 = vcmask 31744   ;;  %vm1037_vm5 = vcmask 25600   ;;  %v691_v62 = vld [vmem:[%s2687_s8 + $0x18] sm:$0xff]  ;;  %v2597_v53 = vmov 0.0  }
  0xfe   : > { %2278 = vmatpush.msk.msra.mxu0 %vm733_vm3, %v2675_v0  ;;  %2320 = vmatpush.msk.msra.mxu1 %vm733_vm3, %v2675_v0  ;;  %1035 = vst.msk [vmem:[#allocation2] sm:$0xff] %vm702_vm4, %v2597_v53  ;;  %v694_v44 = vld [vmem:[%s2687_s8 + $0x30] sm:$0xff]  ;;  %v695_v25 = vld [vmem:[%s2687_s8 + $0x38] sm:$0xff]  ;;  %v689_v45 = vld [vmem:[%s2687_s8 + $0x8] sm:$0xff] }
  0xff   : > { %2321 = vmatpush.msk.msra.mxu2 %vm733_vm3, %v2675_v0  ;;  %2322 = vmatpush.msk.msra.mxu3 %vm733_vm3, %v2675_v0  ;;  %1036 = vst.msk [vmem:[#allocation2 + $0x8] sm:$0xff] %vm702_vm4, %v2597_v53  ;;  %v692_v49 = vld [vmem:[%s2687_s8 + $0x20] sm:$0xff]  ;;  %v690_v46 = vld [vmem:[%s2687_s8 + $0x10] sm:$0xff]  ;;  %v693_v51 = vld [vmem:[%s2687_s8 + $0x28] sm:$0xff] }
 0x100   : > { %2279 = vmatmul.msk.f32.vlgmr.msra.gmra.mxu0 %vm702_vm4, %v688_v9  ;;  %1038 = vst.msk [vmem:[#allocation2 + $0x10] sm:$0x3] %vm1037_vm5, %v2597_v53  ;;  %2282 = vmatmul.msk.f32.vlgmr.msra.gmra.mxu1 %vm702_vm4, %v691_v62  ;;  %v696_v50 = vld [vmem:[%s2687_s8 + $0x40] sm:$0xff]  ;;  %v697_v42 = vld [vmem:[%s2687_s8 + $0x48] sm:$0xff] }
 0x101   : > { %2285 = vmatmul.msk.f32.vlgmr.msra.gmra.mxu2 %vm702_vm4, %v694_v44  ;;  %2286 = vmatmul.msk.f32.vlgmr.msra.gmra.mxu3 %vm702_vm4, %v695_v25  ;;  %v3011_v26 = vld [vmem:[%s3925_s3] ss:$0 sm:$0xff] }
 0x108   : > { %2280 = vmatmul.msk.f32.gmra.mxu0 %vm702_vm4, %v689_v45  ;;  %2283 = vmatmul.msk.f32.gmra.mxu1 %vm702_vm4, %v692_v49 }
 0x109   : > { %2287 = vmatmul.msk.f32.gmra.mxu3 %vm702_vm4, %v696_v50 }
 0x110   : > { %2281 = vmatmul.msk.f32.gmra.mxu0 %vm702_vm4, %v690_v46  ;;  %2284 = vmatmul.msk.f32.gmra.mxu1 %vm702_vm4, %v693_v51 }
 0x111   : > { %2288 = vmatmul.msk.f32.gmra.mxu3 %vm702_vm4, %v697_v42 }
 0x17d   : > { %v754_v52 = vpop.f32.mrf.mxu0  ;;  %v763_v47 = vpop.f32.mrf.mxu1 }
 0x17e   : > { %v3014_v54 = vadd.f32 %v3011_v26, %v754_v52  ;;  %v3017_v55 = vadd.f32 %v3011_v26, %v763_v47 }
 0x180   : > { %v784_v29 = vmin.f32 %v3014_v54, 20.0  ;;  %v787_v56 = vmin.f32 %v3017_v55, 20.0  ;;  %vm1004_vm9 = vcmp.gt.f32.partialorder %v3014_v54, 20.0  ;;  %vm1007_vm11 = vcmp.gt.f32.partialorder %v3017_v55, 20.0 }
 0x182   : > { %v794_v57 = vmul.f32 1.442695, %v784_v29  ;;  %v800_v58 = vmul.f32 1.442695, %v787_v56 }
 0x184   : > { %2442 = vpow2.f32 %v794_v57  ;;  %v772_v61 = vpop.f32.mrf.mxu2  ;;  %v775_v48 = vpop.f32.mrf.mxu3 }
 0x185   : > { %2444 = vpow2.f32 %v800_v58  ;;  %v3022_v1 = vadd.f32 %v3011_v26, %v772_v61  ;;  %v3025_v2 = vadd.f32 %v3011_v26, %v775_v48  ;;  %v757_v3 = vpop.f32.mrf.mxu0  ;;  %v766_v4 = vpop.f32.mrf.mxu1 }
 0x186   : > { %v3028_v5 = vadd.f32 %v3011_v26, %v757_v3  ;;  %v3031_v60 = vadd.f32 %v3011_v26, %v766_v4 }
 0x187   : > { %v790_v7 = vmin.f32 %v3022_v1, 20.0  ;;  %v791_v10 = vmin.f32 %v3025_v2, 20.0  ;;  %vm1010_vm5 = vcmp.gt.f32.partialorder %v3022_v1, 20.0 }
 0x188   : > { %v785_v6 = vmin.f32 %v3028_v5, 20.0  ;;  %v788_v13 = vmin.f32 %v3031_v60, 20.0 }
 0x189   : > { %v806_v15 = vmul.f32 1.442695, %v790_v7  ;;  %v808_v8 = vmul.f32 1.442695, %v791_v10 }
 0x18a   : > { %v2443_v14 = vpop.eup %2442  ;;  %v796_v17 = vmul.f32 1.442695, %v785_v6  ;;  %v802_v23 = vmul.f32 1.442695, %v788_v13 }
 0x18b   : > { %v2445_v20 = vpop.eup %2444  ;;  %v814_v21 = vadd.f32 2.0, %v2443_v14  ;;  %2446 = vpow2.f32 %v806_v15 }
 0x18c   : > { %v817_v22 = vadd.f32 2.0, %v2445_v20  ;;  %2448 = vpow2.f32 %v808_v8  ;;  %v778_v18 = vpop.f32.mrf.mxu3 }
 0x18d   : > { %v824_v24 = vmul.f32 %v2443_v14, %v814_v21  ;;  %2450 = vpow2.f32 %v796_v17  ;;  %v3038_v28 = vadd.f32 %v3011_v26, %v778_v18  ;;  %v760_v11 = vpop.f32.mrf.mxu0  ;;  %v769_v33 = vpop.f32.mrf.mxu1 }
 0x18e   : > { %v827_v31 = vmul.f32 %v2445_v20, %v817_v22  ;;  %2452 = vpow2.f32 %v802_v23  ;;  %v3048_v30 = vadd.f32 %v3011_v26, %v760_v11  ;;  %v3054_v63 = vadd.f32 %v3011_v26, %v769_v33 }
 0x18f   : > { %v3040_v59 = vadd.f32 2.0, %v824_v24  ;;  %v792_v32 = vmin.f32 %v3038_v28, 20.0  ;;  %v3051_v38 = vmul.f32 %v824_v24, %v3014_v54 }
 0x190   : > { %v3042_v16 = vadd.f32 2.0, %v827_v31  ;;  %v3059_v62 = vmul.f32 %v827_v31, %v3017_v55  ;;  %v786_v46 = vmin.f32 %v3048_v30, 20.0  ;;  %v789_v8 = vmin.f32 %v3054_v63, 20.0 }
 0x191   : > { %v2447_v27 = vpop.eup %2446  ;;  %2454 = vrcp.f32 %v3040_v59  ;;  %v810_v40 = vmul.f32 1.442695, %v792_v32  ;;  %v863_v19 = vand.u32 2147483647, %v3040_v59  ;;  %v865_v37 = vand.u32 2147483648, %v3040_v59 }
 0x192   : > { %v2449_v34 = vpop.eup %2448  ;;  %2456 = vrcp.f32 %v3042_v16  ;;  %v820_v12 = vadd.f32 2.0, %v2447_v27  ;;  %v908_v53 = vand.u32 2147483647, %v3042_v16  ;;  %v910_v44 = vand.u32 2147483648, %v3042_v16 }
 0x193   : > { %v2451_v35 = vpop.eup %2450  ;;  %v821_v36 = vadd.f32 2.0, %v2449_v34  ;;  %vm859_vm2 = vweird.f32 %v3040_v59  ;;  %vm904_vm6 = vweird.f32 %v3042_v16  ;;  %2458 = vpow2.f32 %v810_v40 }
 0x194   : > { %v815_v39 = vadd.f32 2.0, %v2451_v35  ;;  %v830_v41 = vmul.f32 %v2447_v27, %v820_v12  ;;  %v2453_v9 = vpop.eup %2452  ;;  %vm3076_vm7 = vcmp.eq.f32.partialorder %v863_v19, 8.507059e+37  ;;  %v866_v29 = vor.u32 1.1754944e-38, %v865_v37 }
 0x195   : > { %v831_v43 = vmul.f32 %v2449_v34, %v821_v36  ;;  %vm3082_vm8 = vcmp.eq.f32.partialorder %v908_v53, 8.507059e+37  ;;  %v911_v61 = vor.u32 1.1754944e-38, %v910_v44  ;;  %v818_v4 = vadd.f32 2.0, %v2453_v9 }
 0x196   : > { %v3063_v25 = vmul.f32 %v2451_v35, %v815_v39  ;;  %v3066_v49 = vadd.f32 2.0, %v830_v41  ;;  %v798_v7 = vmul.f32 1.442695, %v786_v46  ;;  %v3093_v15 = vmul.f32 %v830_v41, %v3022_v1 }
 0x197   : > { %v2455_v45 = vpop.eup %2454  ;;  %v3068_v50 = vadd.f32 2.0, %v831_v43  ;;  %v3098_v20 = vmul.f32 %v831_v43, %v3025_v2  ;;  %v3113_v27 = vmul.f32 %v2453_v9, %v818_v4 }
 0x198   : > { %v2457_v51 = vpop.eup %2456  ;;  %v855_v42 = vmul.f32 %v2455_v45, %v3040_v59  ;;  %v3074_v52 = vadd.f32 2.0, %v3063_v25  ;;  %2460 = vrcp.f32 %v3066_v49  ;;  %v953_v3 = vand.u32 2147483647, %v3066_v49 }
 0x199   : > { %v900_v56 = vmul.f32 %v2457_v51, %v3042_v16  ;;  %2462 = vrcp.f32 %v3068_v50  ;;  %vm860_vm10 = vweird.f32 %v2455_v45  ;;  %v955_v6 = vand.u32 2147483648, %v3066_v49  ;;  %v2459_v14 = vpop.eup %2458 }
 0x19a   : > { %v856_v57 = vsub.f32 1.0, %v855_v42  ;;  %2464 = vrcp.f32 %v3074_v52  ;;  %vm905_vm12 = vweird.f32 %v2457_v51  ;;  %vm949_vm13 = vweird.f32 %v3066_v49  ;;  %vm861_vm14 = vmor %vm859_vm2, %vm860_vm10 }
 0x19b   : > { %v901_v48 = vsub.f32 1.0, %v900_v56  ;;  %v968_v21 = vand.u32 2147483647, %v3068_v50  ;;  %vm3103_vm15 = vcmp.eq.f32.partialorder %v953_v3, 8.507059e+37  ;;  %vm964_vm0 = vweird.f32 %v3068_v50  ;;  %vm906_vm1 = vmor %vm904_vm6, %vm905_vm12 }
 0x19c   : > { %v857_v10 = vmul.f32 %v2455_v45, %v856_v57  ;;  %v970_v24 = vand.u32 2147483648, %v3068_v50  ;;  %2466 = vpow2.f32 %v798_v7  ;;  %v956_v59 = vor.u32 1.1754944e-38, %v955_v6 }
 0x19d   : > { %v902_v13 = vmul.f32 %v2457_v51, %v901_v48  ;;  %v822_v12 = vadd.f32 2.0, %v2459_v14  ;;  %vm3123_vm2 = vcmp.eq.f32.partialorder %v968_v21, 8.507059e+37  ;;  %v3133_v53 = vadd.f32 2.0, %v3113_v27 }
 0x19e   : > { %v858_v17 = vadd.f32 %v2455_v45, %v857_v10  ;;  %v2461_v22 = vpop.eup %2460  ;;  %v971_v47 = vor.u32 1.1754944e-38, %v970_v24  ;;  %v804_v48 = vmul.f32 1.442695, %v789_v8  ;;  %v835_v8 = vmul.f32 %v3063_v25, %v3028_v5 }
 0x19f   : > { %v903_v23 = vadd.f32 %v2457_v51, %v902_v13  ;;  %v2463_v31 = vpop.eup %2462  ;;  %v945_v11 = vmul.f32 %v2461_v22, %v3066_v49  ;;  %vm950_vm3 = vweird.f32 %v2461_v22  ;;  %2468 = vrcp.f32 %v3133_v53 }
 0x1a0   : > { %v862_v32 = vsel %vm861_vm14, %v2455_v45, %v858_v17  ;;  %v960_v35 = vmul.f32 %v2463_v31, %v3068_v50  ;;  %v2465_v36 = vpop.eup %2464  ;;  %vm965_vm6 = vweird.f32 %v2463_v31  ;;  %v878_v49 = vand.u32 2147483647, %v3074_v52 }
 0x1a1   : > { %v867_v33 = vsel %vm3076_vm7, %v866_v29, %v862_v32  ;;  %v907_v34 = vsel %vm906_vm1, %v2457_v51, %v903_v23  ;;  %v946_v16 = vsub.f32 1.0, %v945_v11  ;;  %v870_v43 = vmul.f32 %v2465_v36, %v3074_v52  ;;  %vm966_vm10 = vmor %vm964_vm0, %vm965_vm6 }
 0x1a2   : > { %v868_v39 = vmul.f32 %v867_v33, %v3051_v38  ;;  %v912_v40 = vsel %vm3082_vm8, %v911_v61, %v907_v34  ;;  %v961_v37 = vsub.f32 1.0, %v960_v35  ;;  %vm1011_vm7 = vcmp.gt.f32.partialorder %v3025_v2, 20.0  ;;  %vm3141_vm8 = vmor %vm949_vm13, %vm950_vm3 }
 0x1a3   : > { %v913_v19 = vmul.f32 %v912_v40, %v3059_v62  ;;  %v947_v9 = vmul.f32 %v2461_v22, %v946_v16  ;;  %v2467_v62 = vpop.eup %2466  ;;  %v871_v46 = vsub.f32 1.0, %v870_v43  ;;  %v3145_v51 = vmul.f32 %v2459_v14, %v822_v12 }
 0x1a4   : > { %v1014_v38 = vsel %vm1004_vm9, %v3014_v54, %v868_v39  ;;  %v962_v54 = vmul.f32 %v2463_v31, %v961_v37  ;;  %v880_v29 = vand.u32 2147483648, %v3074_v52  ;;  %vm875_vm9 = vweird.f32 %v2465_v36 }
 0x1a5   : > { %1025 = vst.msk [vmem:[#allocation2 + $0x19] sm:$0xff] %vm702_vm4, %v1014_v38  ;;  %v1017_v44 = vsel %vm1007_vm11, %v3017_v55, %v913_v19  ;;  %v948_v42 = vadd.f32 %v2461_v22, %v947_v9  ;;  %v872_v55 = vmul.f32 %v2465_v36, %v871_v46  ;;  %v3157_v58 = vadd.f32 2.0, %v3145_v51  ;;  %v2469_v17 = vpop.eup %2468 }
 0x1a6   : > { %1028 = vst.msk [vmem:[#allocation2 + $0x39] sm:$0xff] %vm702_vm4, %v1017_v44  ;;  %v963_v56 = vadd.f32 %v2463_v31, %v962_v54  ;;  %v816_v61 = vadd.f32 2.0, %v2467_v62  ;;  %vm874_vm11 = vweird.f32 %v3074_v52  ;;  %v881_v50 = vor.u32 1.1754944e-38, %v880_v29 }
 0x1a7   : > { %v952_v57 = vsel %vm3141_vm8, %v2461_v22, %v948_v42  ;;  %v873_v7 = vadd.f32 %v2465_v36, %v872_v55  ;;  %vm876_vm12 = vmor %vm874_vm11, %vm875_vm9  ;;  %2470 = vrcp.f32 %v3157_v58  ;;  %vm879_vm13 = vcmp.eq.f32.partialorder %v878_v49, 8.507059e+37  ;;  %v781_v22 = vpop.f32.mrf.mxu3 }
 0x1a8   : > { %v957_v3 = vsel %vm3103_vm15, %v956_v59, %v952_v57  ;;  %v967_v4 = vsel %vm966_vm10, %v2463_v31, %v963_v56  ;;  %v3172_v21 = vmul.f32 %v2467_v62, %v816_v61  ;;  %2472 = vpow2.f32 %v804_v48 }
 0x1a9   : > { %v958_v10 = vmul.f32 %v957_v3, %v3093_v15  ;;  %v972_v6 = vsel %vm3123_vm2, %v971_v47, %v967_v4  ;;  %v877_v14 = vsel %vm876_vm12, %v2465_v36, %v873_v7  ;;  %v915_v25 = vmul.f32 %v2469_v17, %v3133_v53 }
 0x1aa   : > { %v973_v13 = vmul.f32 %v972_v6, %v3098_v20  ;;  %v882_v15 = vsel %vm879_vm13, %v881_v50, %v877_v14  ;;  %vm1005_vm14 = vcmp.gt.f32.partialorder %v3028_v5, 20.0  ;;  %v3183_v18 = vadd.f32 2.0, %v3172_v21 }
 0x1ab   : > { %v1020_v52 = vsel %vm1010_vm5, %v3022_v1, %v958_v10  ;;  %v883_v23 = vmul.f32 %v882_v15, %v835_v8  ;;  %v923_v1 = vand.u32 2147483647, %v3133_v53  ;;  %v916_v31 = vsub.f32 1.0, %v915_v25 }
 0x1ac   : > { %1031 = vst.msk [vmem:[#allocation2 + $0x61] sm:$0xff] %vm702_vm4, %v1020_v52  ;;  %v1021_v20 = vsel %vm1011_vm7, %v3025_v2, %v973_v13  ;;  %v3187_v32 = vadd.f32 %v3011_v26, %v781_v22  ;;  %v925_v2 = vand.u32 2147483648, %v3133_v53  ;;  %2474 = vrcp.f32 %v3183_v18 }
 0x1ad   : > { %1032 = vst.msk [vmem:[#allocation2 + $0x69] sm:$0xff] %vm702_vm4, %v1021_v20  ;;  %v1015_v24 = vsel %vm1005_vm14, %v3028_v5, %v883_v23  ;;  %v2471_v11 = vpop.eup %2470  ;;  %v917_v59 = vmul.f32 %v2469_v17, %v916_v31  ;;  %vm920_vm15 = vweird.f32 %v2469_v17  ;;  %v838_v5 = vmul.f32 %v3113_v27, %v3031_v60 }
 0x1ae   : > { %1026 = vst.msk [vmem:[#allocation2 + $0x21] sm:$0xff] %vm702_vm4, %v1015_v24  ;;  %v975_v33 = vmul.f32 %v2471_v11, %v3157_v58  ;;  %v793_v34 = vmin.f32 %v3187_v32, 20.0  ;;  %v2473_v35 = vpop.eup %2472  ;;  %vm919_vm0 = vweird.f32 %v3133_v53  ;;  %vm924_vm1 = vcmp.eq.f32.partialorder %v923_v1, 8.507059e+37 }
 0x1af   : > { %v918_v26 = vadd.f32 %v2469_v17, %v917_v59  ;;  %v819_v36 = vadd.f32 2.0, %v2473_v35  ;;  %vm921_vm3 = vmor %vm919_vm0, %vm920_vm15  ;;  %v926_v40 = vor.u32 1.1754944e-38, %v925_v2  ;;  %vm980_vm5 = vweird.f32 %v2471_v11 }
 0x1b0   : > { %v976_v12 = vsub.f32 1.0, %v975_v33  ;;  %v812_v39 = vmul.f32 1.442695, %v793_v34  ;;  %v983_v16 = vand.u32 2147483647, %v3157_v58  ;;  %v985_v19 = vand.u32 2147483648, %v3157_v58 }
 0x1b1   : > { %v922_v37 = vsel %vm921_vm3, %v2469_v17, %v918_v26  ;;  %v829_v43 = vmul.f32 %v2473_v35, %v819_v36  ;;  %vm979_vm2 = vweird.f32 %v3157_v58  ;;  %vm1008_vm6 = vcmp.gt.f32.partialorder %v3031_v60, 20.0 }
 0x1b2   : > { %v977_v41 = vmul.f32 %v2471_v11, %v976_v12  ;;  %2476 = vpow2.f32 %v812_v39  ;;  %v2475_v38 = vpop.eup %2474  ;;  %v927_v27 = vsel %vm924_vm1, %v926_v40, %v922_v37  ;;  %v842_v44 = vmul.f32 %v3145_v51, %v3038_v28  ;;  %vm981_vm7 = vmor %vm979_vm2, %vm980_vm5 }
 0x1b3   : > { %v928_v9 = vmul.f32 %v927_v27, %v838_v5  ;;  %v885_v62 = vmul.f32 %v2475_v38, %v3183_v18  ;;  %v986_v45 = vor.u32 1.1754944e-38, %v985_v19  ;;  %v849_v54 = vadd.f32 2.0, %v829_v43 }
 0x1b4   : > { %v978_v53 = vadd.f32 %v2471_v11, %v977_v41  ;;  %vm984_vm8 = vcmp.eq.f32.partialorder %v983_v16, 8.507059e+37  ;;  %v895_v56 = vand.u32 2147483648, %v3183_v18  ;;  %vm890_vm9 = vweird.f32 %v2475_v38 }
 0x1b5   : > { %v1018_v46 = vsel %vm1008_vm6, %v3031_v60, %v928_v9  ;;  %v886_v47 = vsub.f32 1.0, %v885_v62  ;;  %2478 = vrcp.f32 %v849_v54  ;;  %v893_v51 = vand.u32 2147483647, %v3183_v18 }
 0x1b6   : > { %v982_v42 = vsel %vm981_vm7, %v2471_v11, %v978_v53  ;;  %1029 = vst.msk [vmem:[#allocation2 + $0x49] sm:$0xff] %vm702_vm4, %v1018_v46  ;;  %vm1012_vm10 = vcmp.gt.f32.partialorder %v3038_v28, 20.0  ;;  %vm889_vm11 = vweird.f32 %v3183_v18  ;;  %v896_v48 = vor.u32 1.1754944e-38, %v895_v56 }
 0x1b7   : > { %v987_v29 = vsel %vm984_vm8, %v986_v45, %v982_v42  ;;  %v887_v57 = vmul.f32 %v2475_v38, %v886_v47  ;;  %vm891_vm12 = vmor %vm889_vm11, %vm890_vm9  ;;  %v836_v4 = vmul.f32 %v3172_v21, %v3048_v30  ;;  %vm894_vm13 = vcmp.eq.f32.partialorder %v893_v51, 8.507059e+37 }
 0x1b8   : > { %v2477_v55 = vpop.eup %2476  ;;  %v988_v49 = vmul.f32 %v987_v29, %v842_v44  ;;  %vm1006_vm14 = vcmp.gt.f32.partialorder %v3048_v30, 20.0  ;;  %v940_v17 = vand.u32 2147483648, %v849_v54  ;;  %v938_v15 = vand.u32 2147483647, %v849_v54 }
 0x1b9   : > { %v823_v58 = vadd.f32 2.0, %v2477_v55  ;;  %v888_v61 = vadd.f32 %v2475_v38, %v887_v57  ;;  %vm934_vm0 = vweird.f32 %v849_v54  ;;  %v839_v23 = vmul.f32 %v829_v43, %v3054_v63 }
 0x1ba   : > { %v1022_v60 = vsel %vm1012_vm10, %v3038_v28, %v988_v49  ;;  %v941_v20 = vor.u32 1.1754944e-38, %v940_v17  ;;  %vm939_vm3 = vcmp.eq.f32.partialorder %v938_v15, 8.507059e+37  ;;  %vm1009_vm5 = vcmp.gt.f32.partialorder %v3054_v63, 20.0 }
 0x1bb   : > { %1033 = vst.msk [vmem:[#allocation2 + $0x79] sm:$0xff] %vm702_vm4, %v1022_v60  ;;  %v833_v3 = vmul.f32 %v2477_v55, %v823_v58  ;;  %v892_v7 = vsel %vm891_vm12, %v2475_v38, %v888_v61  ;;  %v2479_v10 = vpop.eup %2478  ;;  %vm1013_vm9 = vcmp.gt.f32.partialorder %v3187_v32, 20.0 }
 0x1bc   : > { %v897_v6 = vsel %vm894_vm13, %v896_v48, %v892_v7  ;;  %v930_v8 = vmul.f32 %v2479_v10, %v849_v54  ;;  %vm935_vm15 = vweird.f32 %v2479_v10 }
 0x1bd   : > { %v853_v50 = vadd.f32 2.0, %v833_v3  ;;  %v898_v13 = vmul.f32 %v897_v6, %v836_v4  ;;  %vm936_vm1 = vmor %vm934_vm0, %vm935_vm15  ;;  %v843_v35 = vmul.f32 %v833_v3, %v3187_v32 }
 0x1be   : > { %v931_v14 = vsub.f32 1.0, %v930_v8 }
 0x1bf   : > { %2480 = vrcp.f32 %v853_v50  ;;  %v1016_v28 = vsel %vm1006_vm14, %v3048_v30, %v898_v13  ;;  %v1000_v31 = vand.u32 2147483648, %v853_v50  ;;  %v998_v59 = vand.u32 2147483647, %v853_v50 }
 0x1c0   : > { %1027 = vst.msk [vmem:[#allocation2 + $0x31] sm:$0xff] %vm702_vm4, %v1016_v28  ;;  %v932_v52 = vmul.f32 %v2479_v10, %v931_v14  ;;  %vm994_vm6 = vweird.f32 %v853_v50 }
 0x1c1   : > { %v1001_v34 = vor.u32 1.1754944e-38, %v1000_v31  ;;  %vm999_vm8 = vcmp.eq.f32.partialorder %v998_v59, 8.507059e+37 }
 0x1c2   : > { %v933_v21 = vadd.f32 %v2479_v10, %v932_v52 }
 0x1c4   : > { %v937_v25 = vsel %vm936_vm1, %v2479_v10, %v933_v21 }
 0x1c5   : > { %v2481_v22 = vpop.eup %2480  ;;  %v942_v18 = vsel %vm939_vm3, %v941_v20, %v937_v25 }
 0x1c6   : > { %v990_v1 = vmul.f32 %v2481_v22, %v853_v50  ;;  %v943_v24 = vmul.f32 %v942_v18, %v839_v23  ;;  %vm995_vm2 = vweird.f32 %v2481_v22 }
 0x1c7   : > { %vm996_vm7 = vmor %vm994_vm6, %vm995_vm2 }
 0x1c8   : > { %v991_v30 = vsub.f32 1.0, %v990_v1  ;;  %v1019_v11 = vsel %vm1009_vm5, %v3054_v63, %v943_v24 }
 0x1c9   : > { %1030 = vst.msk [vmem:[#allocation2 + $0x51] sm:$0xff] %vm702_vm4, %v1019_v11 }
 0x1ca   : > { %v992_v2 = vmul.f32 %v2481_v22, %v991_v30 }
 0x1cc   : > { %v993_v33 = vadd.f32 %v2481_v22, %v992_v2 }
 0x1ce   : > { %v997_v5 = vsel %vm996_vm7, %v2481_v22, %v993_v33 }
 0x1cf   : > { %v1002_v26 = vsel %vm999_vm8, %v1001_v34, %v997_v5 }
 0x1d0   : > { %v1003_v12 = vmul.f32 %v1002_v26, %v843_v35 }
 0x1d2   : > { %v1023_v36 = vsel %vm1013_vm9, %v3187_v32, %v1003_v12 }
 0x1d3   : > { %1034 = vst.msk [vmem:[#allocation2 + $0x81] sm:$0xff] %vm702_vm4, %v1023_v36 }
 0x1d4 PF: > { %p2289_p11 = scmp.ne.s32.totalorder %s2578_s18, 3 }
 0x1d5   : > { %s2290_s29 = sadd.s32 (!%p2289_p11), 4294967295, %s2670_s25 }
 0x1d6   : > { %1042 = sbr.rel (%p2289_p11) target bundleno = 690 (0x2b2), region = 52  ;;  %s2291_s30 = sshll.u32 (!%p2289_p11), %s2290_s29, 4 }
 0x1d7   : > { %s1045_s6 = scalar_lea.vmem (!%p2289_p11), %s2687_s8, %s2291_s30 }
 0x1db   : > { %vm1091_vm10 = vcmask 1043456   ;;  %vm1060_vm11 = vcmask 31744   ;;  %vm1395_vm12 = vcmask 25600   ;;  %v2598_v63 = vmov 0.0   ;;  %v1046_v32 = vld [vmem:[%s1045_s6] sm:$0xff]  ;;  %v1049_v39 = vld [vmem:[%s1045_s6 + $0x18] sm:$0xff] }
 0x1dc   : > { %2292 = vmatpush.msk.msra.mxu0 %vm1091_vm10, %v2675_v0  ;;  %2323 = vmatpush.msk.msra.mxu1 %vm1091_vm10, %v2675_v0  ;;  %1393 = vst.msk [vmem:[#allocation2 + $0x78] sm:$0xff] %vm1060_vm11, %v2598_v63  ;;  %v1052_v40 = vld [vmem:[%s1045_s6 + $0x30] sm:$0xff]  ;;  %v1053_v16 = vld [vmem:[%s1045_s6 + $0x38] sm:$0xff]  ;;  %v1047_v19 = vld [vmem:[%s1045_s6 + $0x8] sm:$0xff] }
 0x1dd   : > { %2324 = vmatpush.msk.msra.mxu2 %vm1091_vm10, %v2675_v0  ;;  %2325 = vmatpush.msk.msra.mxu3 %vm1091_vm10, %v2675_v0  ;;  %1394 = vst.msk [vmem:[#allocation2 + $0x80] sm:$0xff] %vm1060_vm11, %v2598_v63  ;;  %v1050_v37 = vld [vmem:[%s1045_s6 + $0x20] sm:$0xff]  ;;  %v1048_v0 = vld [vmem:[%s1045_s6 + $0x10] sm:$0xff]  ;;  %v1051_v43 = vld [vmem:[%s1045_s6 + $0x28] sm:$0xff] }
 0x1de   : > { %1396 = vst.msk [vmem:[#allocation2 + $0x88] sm:$0x3] %vm1395_vm12, %v2598_v63  ;;  %2293 = vmatmul.msk.f32.vlgmr.msra.gmra.mxu0 %vm1060_vm11, %v1046_v32  ;;  %2296 = vmatmul.msk.f32.vlgmr.msra.gmra.mxu1 %vm1060_vm11, %v1049_v39  ;;  %v1054_v41 = vld [vmem:[%s1045_s6 + $0x40] sm:$0xff]  ;;  %v1055_v38 = vld [vmem:[%s1045_s6 + $0x48] sm:$0xff] }
 0x1df   : > { %2299 = vmatmul.msk.f32.vlgmr.msra.gmra.mxu2 %vm1060_vm11, %v1052_v40  ;;  %2300 = vmatmul.msk.f32.vlgmr.msra.gmra.mxu3 %vm1060_vm11, %v1053_v16  ;;  %v3248_v27 = vld [vmem:[%s3925_s3] ss:$0 sm:$0xff] }
 0x1e6   : > { %2294 = vmatmul.msk.f32.gmra.mxu0 %vm1060_vm11, %v1047_v19  ;;  %2297 = vmatmul.msk.f32.gmra.mxu1 %vm1060_vm11, %v1050_v37 }
 0x1e7   : > { %2301 = vmatmul.msk.f32.gmra.mxu3 %vm1060_vm11, %v1054_v41 }
 0x1ee   : > { %2295 = vmatmul.msk.f32.gmra.mxu0 %vm1060_vm11, %v1048_v0  ;;  %2298 = vmatmul.msk.f32.gmra.mxu1 %vm1060_vm11, %v1051_v43 }
 0x1ef   : > { %2302 = vmatmul.msk.f32.gmra.mxu3 %vm1060_vm11, %v1055_v38 }
 0x25b   : > { %v1112_v9 = vpop.f32.mrf.mxu0  ;;  %v1121_v53 = vpop.f32.mrf.mxu1 }
 0x25c   : > { %v3251_v62 = vadd.f32 %v3248_v27, %v1112_v9  ;;  %v3254_v44 = vadd.f32 %v3248_v27, %v1121_v53 }
 0x25e   : > { %v1142_v45 = vmin.f32 %v3251_v62, 20.0  ;;  %v1145_v54 = vmin.f32 %v3254_v44, 20.0  ;;  %vm1362_vm0 = vcmp.gt.f32.partialorder %v3251_v62, 20.0  ;;  %vm1365_vm3 = vcmp.gt.f32.partialorder %v3254_v44, 20.0 }
 0x260   : > { %v1152_v46 = vmul.f32 1.442695, %v1142_v45  ;;  %v1158_v42 = vmul.f32 1.442695, %v1145_v54 }
 0x262   : > { %2483 = vpow2.f32 %v1152_v46  ;;  %v1130_v47 = vpop.f32.mrf.mxu2  ;;  %v1133_v29 = vpop.f32.mrf.mxu3 }
 0x263   : > { %2485 = vpow2.f32 %v1158_v42  ;;  %v3259_v56 = vadd.f32 %v3248_v27, %v1130_v47  ;;  %v3262_v55 = vadd.f32 %v3248_v27, %v1133_v29  ;;  %v1115_v49 = vpop.f32.mrf.mxu0  ;;  %v1124_v57 = vpop.f32.mrf.mxu1 }
 0x264   : > { %v3265_v51 = vadd.f32 %v3248_v27, %v1115_v49  ;;  %v3268_v58 = vadd.f32 %v3248_v27, %v1124_v57 }
 0x265   : > { %v1148_v60 = vmin.f32 %v3259_v56, 20.0  ;;  %v1149_v61 = vmin.f32 %v3262_v55, 20.0  ;;  %vm1368_vm12 = vcmp.gt.f32.partialorder %v3259_v56, 20.0 }
 0x266   : > { %v1143_v48 = vmin.f32 %v3265_v51, 20.0  ;;  %v1146_v3 = vmin.f32 %v3268_v58, 20.0 }
 0x267   : > { %v1164_v4 = vmul.f32 1.442695, %v1148_v60  ;;  %v1166_v7 = vmul.f32 1.442695, %v1149_v61 }
 0x268   : > { %v2484_v10 = vpop.eup %2483  ;;  %v1154_v6 = vmul.f32 1.442695, %v1143_v48  ;;  %v1160_v28 = vmul.f32 1.442695, %v1146_v3 }
 0x269   : > { %v2486_v50 = vpop.eup %2485  ;;  %v1172_v13 = vadd.f32 2.0, %v2484_v10  ;;  %2487 = vpow2.f32 %v1164_v4 }
 0x26a   : > { %v1175_v8 = vadd.f32 2.0, %v2486_v50  ;;  %2489 = vpow2.f32 %v1166_v7  ;;  %v1136_v14 = vpop.f32.mrf.mxu3 }
 0x26b   : > { %v1182_v17 = vmul.f32 %v2484_v10, %v1172_v13  ;;  %2491 = vpow2.f32 %v1154_v6  ;;  %v3275_v52 = vadd.f32 %v3248_v27, %v1136_v14  ;;  %v1118_v23 = vpop.f32.mrf.mxu0  ;;  %v1127_v1 = vpop.f32.mrf.mxu1 }
 0x26c   : > { %v1185_v15 = vmul.f32 %v2486_v50, %v1175_v8  ;;  %2493 = vpow2.f32 %v1160_v28  ;;  %v3285_v11 = vadd.f32 %v3248_v27, %v1118_v23  ;;  %v3291_v34 = vadd.f32 %v3248_v27, %v1127_v1 }
 0x26d   : > { %v3277_v21 = vadd.f32 2.0, %v1182_v17  ;;  %v1150_v20 = vmin.f32 %v3275_v52, 20.0  ;;  %v3288_v2 = vmul.f32 %v1182_v17, %v3251_v62 }
 0x26e   : > { %v3279_v22 = vadd.f32 2.0, %v1185_v15  ;;  %v3296_v63 = vmul.f32 %v1185_v15, %v3254_v44  ;;  %v1144_v41 = vmin.f32 %v3285_v11, 20.0  ;;  %v1147_v4 = vmin.f32 %v3291_v34, 20.0 }
 0x26f   : > { %v2488_v25 = vpop.eup %2487  ;;  %2495 = vrcp.f32 %v3277_v21  ;;  %v1168_v33 = vmul.f32 1.442695, %v1150_v20  ;;  %v1221_v35 = vand.u32 2147483647, %v3277_v21  ;;  %v1223_v5 = vand.u32 2147483648, %v3277_v21 }
 0x270   : > { %v2490_v18 = vpop.eup %2489  ;;  %2497 = vrcp.f32 %v3279_v22  ;;  %v1178_v30 = vadd.f32 2.0, %v2488_v25  ;;  %v1266_v32 = vand.u32 2147483647, %v3279_v22  ;;  %v1268_v39 = vand.u32 2147483648, %v3279_v22 }
 0x271   : > { %v2492_v24 = vpop.eup %2491  ;;  %v1179_v31 = vadd.f32 2.0, %v2490_v18  ;;  %vm1217_vm4 = vweird.f32 %v3277_v21  ;;  %vm1262_vm13 = vweird.f32 %v3279_v22  ;;  %2499 = vpow2.f32 %v1168_v33 }
 0x272   : > { %v1173_v59 = vadd.f32 2.0, %v2492_v24  ;;  %v1188_v26 = vmul.f32 %v2488_v25, %v1178_v30  ;;  %v2494_v36 = vpop.eup %2493  ;;  %vm3313_vm14 = vcmp.eq.f32.partialorder %v1221_v35, 8.507059e+37  ;;  %v1224_v53 = vor.u32 1.1754944e-38, %v1223_v5 }
 0x273   : > { %v1189_v12 = vmul.f32 %v2490_v18, %v1179_v31  ;;  %vm3319_vm15 = vcmp.eq.f32.partialorder %v1266_v32, 8.507059e+37  ;;  %v1269_v42 = vor.u32 1.1754944e-38, %v1268_v39  ;;  %v1176_v49 = vadd.f32 2.0, %v2494_v36 }
 0x274   : > { %v3300_v40 = vmul.f32 %v2492_v24, %v1173_v59  ;;  %v3303_v19 = vadd.f32 2.0, %v1188_v26  ;;  %v1156_v57 = vmul.f32 1.442695, %v1144_v41  ;;  %v3330_v3 = vmul.f32 %v1188_v26, %v3259_v56 }
 0x275   : > { %v2496_v16 = vpop.eup %2495  ;;  %v3305_v37 = vadd.f32 2.0, %v1189_v12  ;;  %v3335_v6 = vmul.f32 %v1189_v12, %v3262_v55  ;;  %v3350_v23 = vmul.f32 %v2494_v36, %v1176_v49 }
 0x276   : > { %v2498_v0 = vpop.eup %2497  ;;  %v1213_v43 = vmul.f32 %v2496_v16, %v3277_v21  ;;  %v3311_v38 = vadd.f32 2.0, %v3300_v40  ;;  %2501 = vrcp.f32 %v3303_v19  ;;  %v1311_v29 = vand.u32 2147483647, %v3303_v19 }
 0x277   : > { %v1258_v45 = vmul.f32 %v2498_v0, %v3279_v22  ;;  %2503 = vrcp.f32 %v3305_v37  ;;  %vm1218_vm1 = vweird.f32 %v2496_v16  ;;  %v1313_v61 = vand.u32 2147483648, %v3303_v19  ;;  %v2500_v7 = vpop.eup %2499 }
 0x278   : > { %v1214_v54 = vsub.f32 1.0, %v1213_v43  ;;  %2505 = vrcp.f32 %v3311_v38  ;;  %vm1263_vm5 = vweird.f32 %v2498_v0  ;;  %vm1307_vm2 = vweird.f32 %v3303_v19  ;;  %vm1219_vm6 = vmor %vm1217_vm4, %vm1218_vm1 }
 0x279   : > { %v1259_v47 = vsub.f32 1.0, %v1258_v45  ;;  %v1326_v50 = vand.u32 2147483647, %v3305_v37  ;;  %vm3340_vm7 = vcmp.eq.f32.partialorder %v1311_v29, 8.507059e+37  ;;  %vm1322_vm8 = vweird.f32 %v3305_v37  ;;  %vm1264_vm9 = vmor %vm1262_vm13, %vm1263_vm5 }
 0x27a   : > { %v1215_v60 = vmul.f32 %v2496_v16, %v1214_v54  ;;  %v1328_v14 = vand.u32 2147483648, %v3305_v37  ;;  %2507 = vpow2.f32 %v1156_v57  ;;  %v1314_v21 = vor.u32 1.1754944e-38, %v1313_v61 }
 0x27b   : > { %v1260_v48 = vmul.f32 %v2498_v0, %v1259_v47  ;;  %v1180_v24 = vadd.f32 2.0, %v2500_v7  ;;  %vm3360_vm4 = vcmp.eq.f32.partialorder %v1326_v50, 8.507059e+37  ;;  %v3370_v36 = vadd.f32 2.0, %v3350_v23  ;;  %v1139_v50 = vpop.f32.mrf.mxu3 }
 0x27c   : > { %v1216_v10 = vadd.f32 %v2496_v16, %v1215_v60  ;;  %v2502_v13 = vpop.eup %2501  ;;  %v1329_v43 = vor.u32 1.1754944e-38, %v1328_v14  ;;  %v1238_v9 = vand.u32 2147483648, %v3311_v38 }
 0x27d   : > { %v1261_v8 = vadd.f32 %v2498_v0, %v1260_v48  ;;  %v2504_v17 = vpop.eup %2503  ;;  %v1303_v20 = vmul.f32 %v2502_v13, %v3303_v19  ;;  %vm1308_vm10 = vweird.f32 %v2502_v13  ;;  %v3382_v41 = vmul.f32 %v2500_v7, %v1180_v24 }
 0x27e   : > { %v1220_v15 = vsel %vm1219_vm6, %v2496_v16, %v1216_v10  ;;  %v1318_v18 = vmul.f32 %v2504_v17, %v3305_v37  ;;  %v2506_v30 = vpop.eup %2505  ;;  %vm1323_vm13 = vweird.f32 %v2504_v17  ;;  %2509 = vrcp.f32 %v3370_v36 }
 0x27f   : > { %v1225_v25 = vsel %vm3313_vm14, %v1224_v53, %v1220_v15  ;;  %v1265_v1 = vsel %vm1264_vm9, %v2498_v0, %v1261_v8  ;;  %v1304_v22 = vsub.f32 1.0, %v1303_v20  ;;  %v1228_v26 = vmul.f32 %v2506_v30, %v3311_v38  ;;  %vm1324_vm1 = vmor %vm1322_vm8, %vm1323_vm13 }
 0x280   : > { %v1226_v31 = vmul.f32 %v1225_v25, %v3288_v2  ;;  %v1270_v59 = vsel %vm3319_vm15, %v1269_v42, %v1265_v1  ;;  %v1319_v35 = vsub.f32 1.0, %v1318_v18  ;;  %vm1369_vm14 = vcmp.gt.f32.partialorder %v3262_v55, 20.0  ;;  %vm3378_vm15 = vmor %vm1307_vm2, %vm1308_vm10 }
 0x281   : > { %v1271_v33 = vmul.f32 %v1270_v59, %v3296_v63  ;;  %v1305_v12 = vmul.f32 %v2502_v13, %v1304_v22  ;;  %v2508_v63 = vpop.eup %2507  ;;  %v1229_v16 = vsub.f32 1.0, %v1228_v26  ;;  %v1236_v19 = vand.u32 2147483647, %v3311_v38 }
 0x282   : > { %v1372_v2 = vsel %vm1362_vm0, %v3251_v62, %v1226_v31  ;;  %v1320_v62 = vmul.f32 %v2504_v17, %v1319_v35  ;;  %vm1233_vm0 = vweird.f32 %v2506_v30  ;;  %v3394_v54 = vadd.f32 2.0, %v3382_v41 }
 0x283   : > { %1382 = vst.msk [vmem:[#allocation2 + $0x1] sm:$0xff] %vm1060_vm11, %v1372_v2  ;;  %v1375_v32 = vsel %vm1365_vm3, %v3254_v44, %v1271_v33  ;;  %v1306_v0 = vadd.f32 %v2502_v13, %v1305_v12  ;;  %v1230_v44 = vmul.f32 %v2506_v30, %v1229_v16  ;;  %v1174_v46 = vadd.f32 2.0, %v2508_v63 }
 0x284   : > { %1385 = vst.msk [vmem:[#allocation2 + $0x21] sm:$0xff] %vm1060_vm11, %v1375_v32  ;;  %v1321_v53 = vadd.f32 %v2504_v17, %v1320_v62  ;;  %v1162_v42 = vmul.f32 1.442695, %v1147_v4  ;;  %vm1232_vm3 = vweird.f32 %v3311_v38  ;;  %v1239_v37 = vor.u32 1.1754944e-38, %v1238_v9  ;;  %v2510_v7 = vpop.eup %2509 }
 0x285   : > { %v1310_v45 = vsel %vm3378_vm15, %v2502_v13, %v1306_v0  ;;  %v1231_v49 = vadd.f32 %v2506_v30, %v1230_v44  ;;  %vm1234_vm5 = vmor %vm1232_vm3, %vm1233_vm0  ;;  %2511 = vrcp.f32 %v3394_v54  ;;  %v1193_v48 = vmul.f32 %v3300_v40, %v3265_v51 }
 0x286   : > { %v1315_v47 = vsel %vm3340_vm7, %v1314_v21, %v1310_v45  ;;  %v1325_v29 = vsel %vm1324_vm1, %v2504_v17, %v1321_v53  ;;  %vm1237_vm2 = vcmp.eq.f32.partialorder %v1236_v19, 8.507059e+37  ;;  %v3409_v10 = vmul.f32 %v2508_v63, %v1174_v46 }
 0x287   : > { %v1316_v57 = vmul.f32 %v1315_v47, %v3330_v3  ;;  %v1330_v60 = vsel %vm3360_vm4, %v1329_v43, %v1325_v29  ;;  %v1235_v4 = vsel %vm1234_vm5, %v2506_v30, %v1231_v49  ;;  %2513 = vpow2.f32 %v1162_v42 }
 0x288   : > { %v1331_v61 = vmul.f32 %v1330_v60, %v3335_v6  ;;  %v1240_v3 = vsel %vm1237_vm2, %v1239_v37, %v1235_v4  ;;  %v1273_v40 = vmul.f32 %v2510_v7, %v3370_v36  ;;  %vm1363_vm6 = vcmp.gt.f32.partialorder %v3265_v51, 20.0 }
 0x289   : > { %v1378_v38 = vsel %vm1368_vm12, %v3259_v56, %v1316_v57  ;;  %v1241_v13 = vmul.f32 %v1240_v3, %v1193_v48  ;;  %v1281_v56 = vand.u32 2147483647, %v3370_v36  ;;  %v3420_v8 = vadd.f32 2.0, %v3409_v10 }
 0x28a   : > { %1388 = vst.msk [vmem:[#allocation2 + $0x49] sm:$0xff] %vm1060_vm11, %v1378_v38  ;;  %v1379_v6 = vsel %vm1369_vm14, %v3262_v55, %v1331_v61  ;;  %v1274_v14 = vsub.f32 1.0, %v1273_v40  ;;  %v3424_v17 = vadd.f32 %v3248_v27, %v1139_v50  ;;  %v1283_v55 = vand.u32 2147483648, %v3370_v36 }
 0x28b   : > { %1389 = vst.msk [vmem:[#allocation2 + $0x51] sm:$0xff] %vm1060_vm11, %v1379_v6  ;;  %v1373_v28 = vsel %vm1363_vm6, %v3265_v51, %v1241_v13  ;;  %v2512_v15 = vpop.eup %2511  ;;  %2515 = vrcp.f32 %v3420_v8  ;;  %vm1278_vm7 = vweird.f32 %v2510_v7  ;;  %v1196_v51 = vmul.f32 %v3350_v23, %v3268_v58 }
 0x28c   : > { %1383 = vst.msk [vmem:[#allocation2 + $0x9] sm:$0xff] %vm1060_vm11, %v1373_v28  ;;  %v1275_v20 = vmul.f32 %v2510_v7, %v1274_v14  ;;  %v1333_v21 = vmul.f32 %v2512_v15, %v3394_v54  ;;  %v1151_v25 = vmin.f32 %v3424_v17, 20.0  ;;  %vm1277_vm8 = vweird.f32 %v3370_v36 }
 0x28d   : > { %v2514_v1 = vpop.eup %2513  ;;  %vm1282_vm9 = vcmp.eq.f32.partialorder %v1281_v56, 8.507059e+37  ;;  %vm1279_vm10 = vmor %vm1277_vm8, %vm1278_vm7  ;;  %v1284_v31 = vor.u32 1.1754944e-38, %v1283_v55  ;;  %vm1338_vm12 = vweird.f32 %v2512_v15  ;;  %v1341_v59 = vand.u32 2147483647, %v3394_v54 }
 0x28e   : > { %v1276_v27 = vadd.f32 %v2510_v7, %v1275_v20  ;;  %v1334_v18 = vsub.f32 1.0, %v1333_v21  ;;  %v1177_v24 = vadd.f32 2.0, %v2514_v1  ;;  %v1170_v30 = vmul.f32 1.442695, %v1151_v25 }
 0x28f   : > { %v1343_v22 = vand.u32 2147483648, %v3394_v54  ;;  %vm1337_vm4 = vweird.f32 %v3394_v54  ;;  %vm1366_vm13 = vcmp.gt.f32.partialorder %v3268_v58, 20.0  ;;  %v1200_v63 = vmul.f32 %v3382_v41, %v3275_v52 }
 0x290   : > { %v1280_v33 = vsel %vm1279_vm10, %v2510_v7, %v1276_v27  ;;  %v1335_v35 = vmul.f32 %v2512_v15, %v1334_v18  ;;  %v1187_v5 = vmul.f32 %v2514_v1, %v1177_v24  ;;  %2517 = vpow2.f32 %v1170_v30  ;;  %vm1339_vm14 = vmor %vm1337_vm4, %vm1338_vm12 }
 0x291   : > { %v2516_v26 = vpop.eup %2515  ;;  %v1285_v23 = vsel %vm1282_vm9, %v1284_v31, %v1280_v33  ;;  %v1344_v32 = vor.u32 1.1754944e-38, %v1343_v22  ;;  %vm1342_vm15 = vcmp.eq.f32.partialorder %v1341_v59, 8.507059e+37  ;;  %v1253_v9 = vand.u32 2147483648, %v3420_v8 }
 0x292   : > { %v1286_v2 = vmul.f32 %v1285_v23, %v1196_v51  ;;  %v1336_v12 = vadd.f32 %v2512_v15, %v1335_v35  ;;  %v1243_v36 = vmul.f32 %v2516_v26, %v3420_v8  ;;  %v1207_v39 = vadd.f32 2.0, %v1187_v5 }
 0x293   : > { %vm1248_vm0 = vweird.f32 %v2516_v26  ;;  %v1251_v41 = vand.u32 2147483647, %v3420_v8  ;;  %vm1370_vm1 = vcmp.gt.f32.partialorder %v3275_v52, 20.0  ;;  %vm1247_vm3 = vweird.f32 %v3420_v8 }
 0x294   : > { %v1376_v62 = vsel %vm1366_vm13, %v3268_v58, %v1286_v2  ;;  %v1340_v16 = vsel %vm1339_vm14, %v2512_v15, %v1336_v12  ;;  %v1244_v0 = vsub.f32 1.0, %v1243_v36  ;;  %2519 = vrcp.f32 %v1207_v39  ;;  %vm1249_vm5 = vmor %vm1247_vm3, %vm1248_vm0 }
 0x295   : > { %1386 = vst.msk [vmem:[#allocation2 + $0x31] sm:$0xff] %vm1060_vm11, %v1376_v62  ;;  %v1345_v43 = vsel %vm1342_vm15, %v1344_v32, %v1340_v16  ;;  %v1254_v46 = vor.u32 1.1754944e-38, %v1253_v9  ;;  %v1194_v47 = vmul.f32 %v3409_v10, %v3285_v11  ;;  %vm1252_vm2 = vcmp.eq.f32.partialorder %v1251_v41, 8.507059e+37 }
 0x296   : > { %v2518_v53 = vpop.eup %2517  ;;  %v1346_v44 = vmul.f32 %v1345_v43, %v1200_v63  ;;  %v1245_v19 = vmul.f32 %v2516_v26, %v1244_v0  ;;  %vm1364_vm6 = vcmp.gt.f32.partialorder %v3285_v11, 20.0  ;;  %v1298_v4 = vand.u32 2147483648, %v1207_v39 }
 0x297   : > { %v1181_v45 = vadd.f32 2.0, %v2518_v53  ;;  %v1296_v38 = vand.u32 2147483647, %v1207_v39  ;;  %vm1292_vm8 = vweird.f32 %v1207_v39  ;;  %v1197_v6 = vmul.f32 %v1187_v5, %v3291_v34 }
 0x298   : > { %v1380_v58 = vsel %vm1370_vm1, %v3275_v52, %v1346_v44  ;;  %v1246_v54 = vadd.f32 %v2516_v26, %v1245_v19  ;;  %v1299_v50 = vor.u32 1.1754944e-38, %v1298_v4  ;;  %vm1367_vm12 = vcmp.gt.f32.partialorder %v3291_v34, 20.0 }
 0x299   : > { %1390 = vst.msk [vmem:[#allocation2 + $0x61] sm:$0xff] %vm1060_vm11, %v1380_v58  ;;  %v1191_v42 = vmul.f32 %v2518_v53, %v1181_v45  ;;  %vm1297_vm10 = vcmp.eq.f32.partialorder %v1296_v38, 8.507059e+37  ;;  %vm1371_vm0 = vcmp.gt.f32.partialorder %v3424_v17, 20.0 }
 0x29a   : > { %v1250_v29 = vsel %vm1249_vm5, %v2516_v26, %v1246_v54  ;;  %v2520_v49 = vpop.eup %2519 }
 0x29b   : > { %v1255_v57 = vsel %vm1252_vm2, %v1254_v46, %v1250_v29  ;;  %v1211_v60 = vadd.f32 2.0, %v1191_v42  ;;  %v1288_v61 = vmul.f32 %v2520_v49, %v1207_v39  ;;  %vm1293_vm7 = vweird.f32 %v2520_v49 }
 0x29c   : > { %v1256_v37 = vmul.f32 %v1255_v57, %v1194_v47  ;;  %vm1294_vm9 = vmor %vm1292_vm8, %vm1293_vm7  ;;  %v1201_v25 = vmul.f32 %v1191_v42, %v3424_v17 }
 0x29d   : > { %2521 = vrcp.f32 %v1211_v60  ;;  %v1289_v48 = vsub.f32 1.0, %v1288_v61  ;;  %v1358_v28 = vand.u32 2147483648, %v1211_v60  ;;  %v1356_v55 = vand.u32 2147483647, %v1211_v60 }
 0x29e   : > { %v1374_v52 = vsel %vm1364_vm6, %v3285_v11, %v1256_v37  ;;  %vm1352_vm13 = vweird.f32 %v1211_v60 }
 0x29f   : > { %1384 = vst.msk [vmem:[#allocation2 + $0x19] sm:$0xff] %vm1060_vm11, %v1374_v52  ;;  %v1290_v7 = vmul.f32 %v2520_v49, %v1289_v48  ;;  %v1359_v21 = vor.u32 1.1754944e-38, %v1358_v28  ;;  %vm1357_vm15 = vcmp.eq.f32.partialorder %v1356_v55, 8.507059e+37 }
 0x2a1   : > { %v1291_v3 = vadd.f32 %v2520_v49, %v1290_v7 }
 0x2a3   : > { %v2522_v10 = vpop.eup %2521  ;;  %v1295_v13 = vsel %vm1294_vm9, %v2520_v49, %v1291_v3 }
 0x2a4   : > { %v1348_v40 = vmul.f32 %v2522_v10, %v1211_v60  ;;  %v1300_v56 = vsel %vm1297_vm10, %v1299_v50, %v1295_v13  ;;  %vm1353_vm4 = vweird.f32 %v2522_v10 }
 0x2a5   : > { %v1301_v8 = vmul.f32 %v1300_v56, %v1197_v6  ;;  %vm1354_vm14 = vmor %vm1352_vm13, %vm1353_vm4 }
 0x2a6   : > { %v1349_v11 = vsub.f32 1.0, %v1348_v40 }
 0x2a7   : > { %v1377_v14 = vsel %vm1367_vm12, %v3291_v34, %v1301_v8 }
 0x2a8   : > { %v1350_v15 = vmul.f32 %v2522_v10, %v1349_v11  ;;  %1387 = vst.msk [vmem:[#allocation2 + $0x39] sm:$0xff] %vm1060_vm11, %v1377_v14 }
 0x2aa   : > { %v1351_v20 = vadd.f32 %v2522_v10, %v1350_v15 }
 0x2ac   : > { %v1355_v1 = vsel %vm1354_vm14, %v2522_v10, %v1351_v20 }
 0x2ad   : > { %v1360_v51 = vsel %vm1357_vm15, %v1359_v21, %v1355_v1 }
 0x2ae   : > { %v1361_v27 = vmul.f32 %v1360_v51, %v1201_v25 }
 0x2b0   : > { %v1381_v18 = vsel %vm1371_vm0, %v3424_v17, %v1361_v27 }
 0x2b1   : > { %1391 = vst.msk [vmem:[#allocation2 + $0x69] sm:$0xff] %vm1060_vm11, %v1381_v18 }
 0x2b2 PF: > { %v3463_v34 = vld [vmem:[#allocation2 + $0x30] sm:$0xff]  ;;  %v3465_v24 = vld [vmem:[#allocation2 + $0x38] sm:$0xff]  ;;  %vm1492_vm1 = vcmask 1045504   ;;  %vm1447_vm3 = vcmask 1046528   ;;  %v3475_v17 = vld [vmem:[#allocation2 + $0x48] sm:$0xff]  ;;  %s2599_s9 = smov 12  }
 0x2b3   : > { %v1503_v30 = vrot.slane %v3463_v34, 2  ;;  %v3469_v31 = vrot.slane %v3465_v24, 2  ;;  %v1458_v59 = vrot.slane %v3463_v34, 1  ;;  %v3473_v22 = vrot.slane %v3465_v24, 1  ;;  %1553 = vrot.lane.b32.xlu2 %v3475_v17, %s2599_s9  ;;  %v3479_v33 = vld [vmem:[#allocation2 + $0x50] sm:$0xff]  ;;  %s2600_s10 = smov 8  }
 0x2b4   : > { %s2601_s11 = smov 4   ;;  %v1583_v26 = vrot.slane %v3475_v17, 1  ;;  %v1627_v23 = vrot.slane %v3475_v17, 2  ;;  %v3496_v2 = vrot.slane %v3479_v33, 2  ;;  %v3499_v12 = vrot.slane %v3479_v33, 1  ;;  %v1419_v36 = vld [vmem:[#allocation2 + $0x60] sm:$0xff] }
 0x2b5   : > { %v3483_v35 = vsel %vm1492_vm1, %v1503_v30, %v3469_v31  ;;  %v3487_v5 = vsel %vm1447_vm3, %v1458_v59, %v3473_v22  ;;  %v1588_v62 = vrot.slane %v1419_v36, 1  ;;  %s2602_s12 = smov 20   ;;  %s2603_s13 = smov 16   ;;  %v1632_v43 = vrot.slane %v1419_v36, 2  ;;  %v1432_v53 = vld [vmem:[#allocation2 + $0x78] sm:$0xff]  ;;  %v3534_v41 = vld [vmem:[#allocation2 + $0x20] sm:$0xff] }
 0x2b6   : > { %1521 = vrot.lane.b32.xlu1 %v3483_v35, %s2600_s10  ;;  %1476 = vrot.lane.b32.xlu0 %v3487_v5, %s2601_s11  ;;  %v3503_v63 = vsel %vm1492_vm1, %v1627_v23, %v3496_v2  ;;  %v3507_v32 = vsel %vm1447_vm3, %v1583_v26, %v3499_v12  ;;  %v3531_v19 = vld [vmem:[#allocation2 + $0x18] sm:$0xff]  ;;  %s2604_s15 = smov 24   ;;  %v3536_v45 = vld [vmem:[#allocation2] sm:$0xff]  ;;  %v3538_v58 = vld [vmem:[#allocation2 + $0x8] sm:$0xff]  ;;  %v3544_v46 = vrot.slane %v3534_v41, 1  ;;  %s2605_s16 = smov 28  }
 0x2b7   : > { %v1453_v54 = vrot.slane %v3531_v19, 1  ;;  %v1448_v42 = vrot.slane %v3536_v45, 1  ;;  %v1449_v47 = vrot.slane %v3538_v58, 1  ;;  %v3554_v57 = vld [vmem:[#allocation2 + $0x80] sm:$0xff]  ;;  %v1498_v60 = vrot.slane %v3531_v19, 2  ;;  %s2606_s17 = smov 32  }
 0x2b8   : > { %v3510_v39 = vld [vmem:[#allocation2 + $0x68] sm:$0xff]  ;;  %v3558_v37 = vrot.slane %v3534_v41, 2  ;;  %v1712_v61 = vrot.slane %v1432_v53, 1  ;;  %v1493_v52 = vrot.slane %v3536_v45, 2  ;;  %v1494_v48 = vrot.slane %v3538_v58, 2 }
 0x2b9   : > { %v3517_v16 = vrot.slane %v3510_v39, 1  ;;  %v3527_v9 = vrot.slane %v3510_v39, 2  ;;  %v1455_v29 = vsel %vm1447_vm3, %v1453_v54, %v3544_v46  ;;  %v1450_v49 = vsel %vm1447_vm3, %v1448_v42, %v1449_v47  ;;  %v1405_v38 = vld [vmem:[#allocation2 + $0x40] sm:$0x3]  ;;  %v1408_v8 = vld [vmem:[#allocation2 + $0x58] sm:$0x3] }
 0x2ba   : > { %v1713_v4 = vrot.slane %v3554_v57, 1  ;;  %v1500_v7 = vsel %vm1492_vm1, %v1498_v60, %v3558_v37  ;;  %v1495_v3 = vsel %vm1492_vm1, %v1493_v52, %v1494_v48  ;;  %v1461_v50 = vrot.slane %v1405_v38, 1  ;;  %v1418_v21 = vld [vmem:[#allocation2 + $0x58] sm:$0x3]  ;;  %v1421_v51 = vld [vmem:[#allocation2 + $0x70] sm:$0x3] }
 0x2bb   : > { %1557 = vrot.lane.b32.xlu2 %v1419_v36, %s2599_s9  ;;  %v1590_v0 = vsel %vm1447_vm3, %v1588_v62, %v3517_v16  ;;  %v1634_v44 = vsel %vm1492_vm1, %v1632_v43, %v3527_v9  ;;  %v1756_v6 = vrot.slane %v1432_v53, 2  ;;  %v1757_v13 = vrot.slane %v3554_v57, 2  ;;  %v1431_v54 = vld [vmem:[#allocation2 + $0x70] sm:$0x3]  ;;  %v1402_v42 = vld [vmem:[#allocation2 + $0x28] sm:$0x3] }
 0x2bc   : > { %v1714_v10 = vsel %vm1447_vm3, %v1712_v61, %v1713_v4  ;;  %v1462_v40 = vsel %vm1447_vm3, %v3473_v22, %v1461_v50  ;;  %v1466_v11 = vrot.slane %v1408_v8, 1  ;;  %v1511_v14 = vrot.slane %v1408_v8, 2 }
 0x2bd   : > { %v1758_v56 = vsel %vm1492_vm1, %v1756_v6, %v1757_v13  ;;  %v1506_v15 = vrot.slane %v1405_v38, 2  ;;  %v1586_v25 = vrot.slane %v1418_v21, 1  ;;  %v1591_v27 = vrot.slane %v1421_v51, 1  ;;  %v1860_v6 = vld [vmem:[%s3924_s2 + $0x18] sm:$0xff] }
 0x2be   : > { %1525 = vrot.lane.b32.xlu1 %v3503_v63, %s2600_s10  ;;  %1480 = vrot.lane.b32.xlu0 %v3507_v32, %s2601_s11  ;;  %v1467_v28 = vsel %vm1447_vm3, %v3499_v12, %v1466_v11  ;;  %v1512_v55 = vsel %vm1492_vm1, %v3496_v2, %v1511_v14  ;;  %v1635_v59 = vrot.slane %v1421_v51, 2  ;;  %v1630_v26 = vrot.slane %v1418_v21, 2  ;;  %v1858_v11 = vld [vmem:[%s3924_s2 + $0x8] sm:$0xff] }
 0x2bf   : > { %v1507_v20 = vsel %vm1492_vm1, %v3469_v31, %v1506_v15  ;;  %v1587_v1 = vsel %vm1447_vm3, %v3499_v12, %v1586_v25  ;;  %v1592_v18 = vsel %vm1447_vm3, %v3517_v16, %v1591_v27  ;;  %v1501_v38 = vrot.slane %v1402_v42, 2  ;;  %v1857_v15 = vld [vmem:[%s3924_s2] sm:$0xff]  ;;  %v1412_v21 = vld [vmem:[#allocation2 + $0x28] sm:$0x3] }
 0x2c0   : > { %v1636_v23 = vsel %vm1492_vm1, %v3527_v9, %v1635_v59  ;;  %vm1891_vm11 = vcmask 1043456   ;;  %v1620_v25 = vrot.slane %v1412_v21, 2  ;;  %v1576_v27 = vrot.slane %v1412_v21, 1 }
 0x2c1   : > { %vm1785_vm5 = vcmask 31744   ;;  %vm1794_vm2 = vcmask 64512   ;;  %vm1803_vm6 = vcmask 97280   ;;  %vm1812_vm7 = vcmask 130048  }
 0x2c2   : > { %vm1821_vm8 = vcmask 162816   ;;  %vm1830_vm9 = vcmask 195584   ;;  %vm1839_vm10 = vcmask 228352   ;;  %vm1848_vm12 = vcmask 261120  }
 0x2c3   : > { %1645 = vrot.lane.b32.xlu2 %v3503_v63, %s2602_s12  ;;  %vm1866_vm4 = vcmask 293888  }
 0x2c6   : > { %1605 = vrot.lane.b32.xlu1 %v1590_v0, %s2603_s13  ;;  %1601 = vrot.lane.b32.xlu0 %v3507_v32, %s2603_s13 }
 0x2cb   : > { %1681 = vrot.lane.b32.xlu2 %v1432_v53, %s2604_s15 }
 0x2ce   : > { %1677 = vrot.lane.b32.xlu1 %v1419_v36, %s2604_s15  ;;  %1649 = vrot.lane.b32.xlu0 %v1634_v44, %s2602_s12  ;;  %v1631_v36 = vsel %vm1492_vm1, %v3496_v2, %v1630_v26  ;;  %v1577_v26 = vsel %vm1447_vm3, %v3544_v46, %v1576_v27 }
 0x2d3   : > { %1725 = vrot.lane.b32.xlu2 %v1590_v0, %s2605_s16  ;;  %v1399_v0 = vld [vmem:[#allocation2 + $0x10] sm:$0x3] }
 0x2d4   : > { %v1451_v43 = vrot.slane %v1399_v0, 1 }
 0x2d6   : > { %1472 = vrot.lane.b32.xlu1 %v1455_v29, %s2601_s11  ;;  %1468 = vrot.lane.b32.xlu0 %v1450_v49, %s2601_s11  ;;  %v1456_v49 = vrot.slane %v1402_v42, 1  ;;  %v1428_v42 = vld [vmem:[#allocation2 + $0x58] sm:$0x3] }
 0x2db   : > { %1517 = vrot.lane.b32.xlu2 %v1500_v7, %s2600_s10 }
 0x2de   : > { %1513 = vrot.lane.b32.xlu1 %v1495_v3, %s2600_s10  ;;  %1729 = vrot.lane.b32.xlu0 %v1714_v10, %s2605_s16  ;;  %v1496_v3 = vrot.slane %v1399_v0, 2 }
 0x2e0   : > { %v1497_v8 = vsel %vm1492_vm1, %v1494_v48, %v1496_v3 }
 0x2e3   : > { %1478 = vrot.lane.b32.xlu2 %v1462_v40, %s2601_s11  ;;  %v1859_v40 = vld [vmem:[%s3924_s2 + $0x10] sm:$0xff] }
 0x2e6   : > { %1773 = vrot.lane.b32.xlu1 %v1758_v56, %s2606_s17  ;;  %1769 = vrot.lane.b32.xlu0 %v1634_v44, %s2606_s17  ;;  %v1434_v44 = vld [vmem:[#allocation2 + $0x88] sm:$0x3]  ;;  %v1502_v56 = vsel %vm1492_vm1, %v3558_v37, %v1501_v38 }
 0x2eb   : > { %1549 = vrot.lane.b32.xlu2 %v3463_v34, %s2599_s9 }
 0x2ee   : > { %1545 = vrot.lane.b32.xlu1 %v3531_v19, %s2599_s9  ;;  %1482 = vrot.lane.b32.xlu0 %v1467_v28, %s2601_s11  ;;  %v1759_v28 = vrot.slane %v1434_v44, 2 }
 0x2f3   : > { %1593 = vrot.lane.b32.xlu2 %v1455_v29, %s2603_s13  ;;  %v1715_v29 = vrot.slane %v1434_v44, 1 }
 0x2f6   : > { %1527 = vrot.lane.b32.xlu1 %v1512_v55, %s2600_s10  ;;  %1523 = vrot.lane.b32.xlu0 %v1507_v20, %s2600_s10  ;;  %v1760_v55 = vsel %vm1492_vm1, %v1757_v13, %v1759_v28  ;;  %v1415_v20 = vld [vmem:[#allocation2 + $0x40] sm:$0x3] }
 0x2f7   : > { %v1581_v51 = vrot.slane %v1415_v20, 1 }
 0x2f9   : > { %v1582_v59 = vsel %vm1447_vm3, %v3473_v22, %v1581_v51 }
 0x2fb   : > { %1559 = vrot.lane.b32.xlu2 %v3510_v39, %s2599_s9 }
 0x2fe   : > { %1555 = vrot.lane.b32.xlu1 %v3479_v33, %s2599_s9  ;;  %1597 = vrot.lane.b32.xlu0 %v3487_v5, %s2603_s13 }
 0x303   : > { %1603 = vrot.lane.b32.xlu2 %v1587_v1, %s2603_s13 }
 0x306   : > { %1641 = vrot.lane.b32.xlu1 %v3483_v35, %s2602_s12  ;;  %1637 = vrot.lane.b32.xlu0 %v1500_v7, %s2602_s12 }
 0x30b   : > { %1673 = vrot.lane.b32.xlu2 %v3475_v17, %s2604_s15 }
 0x30d   : > { %v3618_v30 = vpop.permute.xlu2 %1553 }
 0x30e   : > { %1669 = vrot.lane.b32.xlu1 %v3463_v34, %s2604_s15  ;;  %1607 = vrot.lane.b32.xlu0 %v1592_v18, %s2603_s13  ;;  %v1621_v18 = vsel %vm1492_vm1, %v3558_v37, %v1620_v25 }
 0x313   : > { %1717 = vrot.lane.b32.xlu2 %v3487_v5, %s2605_s16  ;;  %v1452_v5 = vsel %vm1447_vm3, %v1449_v47, %v1451_v43  ;;  %v1716_v47 = vsel %vm1447_vm3, %v1713_v4, %v1715_v29  ;;  %v1425_v29 = vld [vmem:[#allocation2 + $0x40] sm:$0x3] }
 0x315   : > { %v3628_v62 = vpop.permute.xlu2 %1557 }
 0x316   : > { %1651 = vrot.lane.b32.xlu1 %v1636_v23, %s2602_s12  ;;  %1647 = vrot.lane.b32.xlu0 %v1631_v36, %s2602_s12  ;;  %v1625_v36 = vrot.slane %v1415_v20, 2 }
 0x318   : > { %v1626_v44 = vsel %vm1492_vm1, %v3469_v31, %v1625_v36 }
 0x31b   : > { %1683 = vrot.lane.b32.xlu2 %v3554_v57, %s2604_s15 }
 0x31d   : > { %v3636_v53 = vpop.permute.xlu2 %1645 }
 0x31e   : > { %1679 = vrot.lane.b32.xlu1 %v3510_v39, %s2604_s15  ;;  %1721 = vrot.lane.b32.xlu0 %v3507_v32, %s2605_s16  ;;  %v1710_v32 = vrot.slane %v1431_v54, 1 }
 0x320   : > { %v1711_v52 = vsel %vm1447_vm3, %v3517_v16, %v1710_v32  ;;  %v1861_v16 = vld [vmem:[%s3924_s2 + $0x20] sm:$0xf] }
 0x321   : > { %2327 = vmatpush.msk.msra.mxu2 %vm1891_vm11, %v1861_v16  ;;  %2328 = vmatpush.msk.msra.mxu3 %vm1891_vm11, %v1861_v16 }
 0x322   : > { %2303 = vmatpush.msk.msra.mxu0 %vm1891_vm11, %v1861_v16  ;;  %2326 = vmatpush.msk.msra.mxu1 %vm1891_vm11, %v1861_v16 }
 0x323   : > { %1470 = vrot.lane.b32.xlu2 %v1452_v5, %s2601_s11  ;;  %2330 = vmatpush.msra.mxu2 %v1860_v6 }
 0x324   : > { %2331 = vmatpush.msra.mxu3 %v1860_v6  ;;  %1907 = vmatpush.msra.mxu0 %v1860_v6 }
 0x325   : > { %v3646_v39 = vpop.permute.xlu2 %1681  ;;  %2333 = vmatpush.msra.mxu2 %v1859_v40  ;;  %2329 = vmatpush.msra.mxu1 %v1860_v6 }
 0x326   : > { %1765 = vrot.lane.b32.xlu1 %v3503_v63, %s2606_s17  ;;  %1761 = vrot.lane.b32.xlu0 %v3483_v35, %s2606_s17  ;;  %v1457_v63 = vsel %vm1447_vm3, %v3544_v46, %v1456_v49  ;;  %v1754_v35 = vrot.slane %v1431_v54, 2  ;;  %v1700_v49 = vrot.slane %v1425_v29, 1 }
 0x327   : > { %2334 = vmatpush.msra.mxu3 %v1859_v40  ;;  %2336 = vmatpush.msra.mxu2 %v1858_v11 }
 0x328   : > { %v3648_v60 = vpop.permute.xlu1 %1521  ;;  %v3650_v61 = vpop.permute.xlu0 %1476  ;;  %v1755_v50 = vsel %vm1492_vm1, %v3527_v9, %v1754_v35  ;;  %1908 = vmatpush.msra.mxu0 %v1859_v40  ;;  %2332 = vmatpush.msra.mxu1 %v1859_v40 }
 0x329   : > { %2337 = vmatpush.msra.mxu3 %v1858_v11  ;;  %2339 = vmatpush.msra.mxu2 %v1857_v15  ;;  %v1790_v46 = vsel %vm1785_vm5, %v3463_v34, %v3650_v61  ;;  %v1744_v34 = vrot.slane %v1425_v29, 2 }
 0x32a   : > { %1909 = vmatpush.msra.mxu0 %v1858_v11  ;;  %2335 = vmatpush.msra.mxu1 %v1858_v11 }
 0x32b   : > { %1731 = vrot.lane.b32.xlu2 %v1716_v47, %s2605_s16  ;;  %2340 = vmatpush.msra.mxu3 %v1857_v15  ;;  %v1745_v3 = vsel %vm1492_vm1, %v3469_v31, %v1744_v34 }
 0x32c   : > { %1910 = vmatpush.msra.mxu0 %v1857_v15  ;;  %2338 = vmatpush.msra.mxu1 %v1857_v15 }
 0x32d   : > { %v3662_v7 = vpop.permute.xlu2 %1725 }
 0x32e   : > { %1727 = vrot.lane.b32.xlu1 %v1711_v52, %s2605_s16  ;;  %1474 = vrot.lane.b32.xlu0 %v1457_v63, %s2601_s11 }
 0x330   : > { %v3664_v10 = vpop.permute.xlu1 %1525  ;;  %v3666_v4 = vpop.permute.xlu0 %1480 }
 0x331   : > { %v1792_v54 = vsel %vm1785_vm5, %v3475_v17, %v3666_v4  ;;  %v1705_v17 = vrot.slane %v1428_v42, 1  ;;  %v1701_v4 = vsel %vm1447_vm3, %v3473_v22, %v1700_v49  ;;  %v1749_v22 = vrot.slane %v1428_v42, 2 }
 0x332   : > { %v1801_v32 = vsel %vm1794_vm2, %v1792_v54, %v3664_v10 }
 0x333   : > { %1771 = vrot.lane.b32.xlu2 %v1755_v50, %s2606_s17  ;;  %v1810_v10 = vsel %vm1803_vm6, %v1801_v32, %v3628_v62 }
 0x335   : > { %v1518_v9 = vpop.permute.xlu2 %1517 }
 0x336   : > { %1519 = vrot.lane.b32.xlu1 %v1502_v56, %s2600_s10  ;;  %1515 = vrot.lane.b32.xlu0 %v1497_v8, %s2600_s10 }
 0x338   : > { %v3690_v48 = vpop.permute.xlu1 %1605  ;;  %v1602_v14 = vpop.permute.xlu0 %1601 }
 0x33b   : > { %1551 = vrot.lane.b32.xlu2 %v3465_v24, %s2599_s9 }
 0x33d   : > { %v3703_v1 = vpop.permute.xlu2 %1478 }
 0x33e   : > { %1547 = vrot.lane.b32.xlu1 %v3534_v41, %s2599_s9  ;;  %1775 = vrot.lane.b32.xlu0 %v1760_v55, %s2606_s17 }
 0x340   : > { %v1678_v57 = vpop.permute.xlu1 %1677  ;;  %v1650_v13 = vpop.permute.xlu0 %1649 }
 0x343   : > { %1639 = vrot.lane.b32.xlu2 %v1621_v18, %s2602_s12 }
 0x345   : > { %v3714_v23 = vpop.permute.xlu2 %1549 }
 0x346   : > { %1599 = vrot.lane.b32.xlu1 %v1582_v59, %s2603_s13  ;;  %1595 = vrot.lane.b32.xlu0 %v1577_v26, %s2603_s13 }
 0x348   : > { %v1473_v0 = vpop.permute.xlu1 %1472  ;;  %v1469_v43 = vpop.permute.xlu0 %1468 }
 0x349   : > { %v1788_v37 = vsel %vm1785_vm5, %v3531_v19, %v1473_v0  ;;  %v1799_v19 = vsel %vm1794_vm2, %v1790_v46, %v3648_v60  ;;  %v1786_v47 = vsel %vm1785_vm5, %v3536_v45, %v1469_v43  ;;  %v1706_v45 = vsel %vm1447_vm3, %v3499_v12, %v1705_v17 }
 0x34a   : > { %v3722_v5 = vsel %vm1794_vm2, %v1788_v37, %v1518_v9  ;;  %v1808_v61 = vsel %vm1803_vm6, %v1799_v19, %v3618_v30  ;;  %v1819_v30 = vsel %vm1812_vm7, %v1810_v10, %v3690_v48 }
 0x34b   : > { %1675 = vrot.lane.b32.xlu2 %v3479_v33, %s2604_s15  ;;  %v1817_v63 = vsel %vm1812_vm7, %v1808_v61, %v1602_v14  ;;  %v1828_v50 = vsel %vm1821_vm8, %v1819_v30, %v1650_v13  ;;  %v1806_v46 = vsel %vm1803_vm6, %v3722_v5, %v3714_v23  ;;  %v1791_v23 = vsel %vm1785_vm5, %v3465_v24, %v3703_v1 }
 0x34c   : > { %v1826_v16 = vsel %vm1821_vm8, %v1817_v63, %v3636_v53  ;;  %v1837_v12 = vsel %vm1830_vm9, %v1828_v50, %v3646_v39  ;;  %v1750_v39 = vsel %vm1492_vm1, %v3496_v2, %v1749_v22 }
 0x34d   : > { %v1594_v38 = vpop.permute.xlu2 %1593  ;;  %v1835_v31 = vsel %vm1830_vm9, %v1826_v16, %v1678_v57 }
 0x34e   : > { %1671 = vrot.lane.b32.xlu1 %v3465_v24, %s2604_s15  ;;  %1643 = vrot.lane.b32.xlu0 %v1626_v44, %s2602_s12  ;;  %v1844_v40 = vsel %vm1839_vm10, %v1835_v31, %v3662_v7  ;;  %s2316_s12 = sshll.u32 %s2578_s18, 6 }
 0x34f   : > { %s3839_s13 = scalar_lea.vmem %s2687_s8, %s2316_s12 }
 0x350   : > { %v1514_v60 = vpop.permute.xlu1 %1513  ;;  %v1730_v52 = vpop.permute.xlu0 %1729 }
 0x351   : > { %v1795_v35 = vsel %vm1794_vm2, %v1786_v47, %v1514_v60  ;;  %v1846_v62 = vsel %vm1839_vm10, %v1837_v12, %v1730_v52 }
 0x353   : > { %1763 = vrot.lane.b32.xlu2 %v1745_v3, %s2606_s17 }
 0x355   : > { %v1560_v9 = vpop.permute.xlu2 %1559 }
 0x356   : > { %1723 = vrot.lane.b32.xlu1 %v1706_v45, %s2605_s16  ;;  %1719 = vrot.lane.b32.xlu0 %v1701_v4, %s2605_s16 }
 0x358   : > { %v1774_v53 = vpop.permute.xlu1 %1773  ;;  %v1770_v6 = vpop.permute.xlu0 %1769 }
 0x359   : > { %v1853_v56 = vsel %vm1848_vm12, %v1844_v40, %v1770_v6  ;;  %v1855_v8 = vsel %vm1848_vm12, %v1846_v62, %v1774_v53 }
 0x35a   : > { %2308 = vmatmul.msk.f32.vlgmr.msra.gmra.mxu2 %vm1866_vm4, %v1853_v56  ;;  %2310 = vmatmul.msk.f32.vlgmr.msra.gmra.mxu3 %vm1866_vm4, %v1855_v8 }
 0x35d   : > { %v1604_v48 = vpop.permute.xlu2 %1603 }
 0x35e   : > { %1767 = vrot.lane.b32.xlu0 %v1750_v39, %s2606_s17 }
 0x360   : > { %v1546_v11 = vpop.permute.xlu1 %1545  ;;  %v1483_v28 = vpop.permute.xlu0 %1482 }
 0x361   : > { %v1793_v7 = vsel %vm1785_vm5, %v3479_v33, %v1483_v28  ;;  %v1804_v33 = vsel %vm1803_vm6, %v1795_v35, %v1546_v11 }
 0x362   : > { %v1813_v54 = vsel %vm1812_vm7, %v1804_v33, %v1594_v38  ;;  %v3833_v33 = vld [vmem:[%s3926_s4] ss:$0 sm:$0xff] }
 0x365   : > { %v1674_v21 = vpop.permute.xlu2 %1673 }
 0x368   : > { %v1528_v14 = vpop.permute.xlu1 %1527  ;;  %v1524_v15 = vpop.permute.xlu0 %1523 }
 0x369   : > { %v1802_v55 = vsel %vm1794_vm2, %v1793_v7, %v1528_v14  ;;  %v1800_v52 = vsel %vm1794_vm2, %v1791_v23, %v1524_v15 }
 0x36a   : > { %v1811_v20 = vsel %vm1803_vm6, %v1802_v55, %v1560_v9 }
 0x36d   : > { %v1718_v2 = vpop.permute.xlu2 %1717 }
 0x370   : > { %v1556_v25 = vpop.permute.xlu1 %1555  ;;  %v1598_v51 = vpop.permute.xlu0 %1597 }
 0x371   : > { %v1815_v44 = vsel %vm1812_vm7, %v1806_v46, %v1598_v51  ;;  %v1809_v63 = vsel %vm1803_vm6, %v1800_v52, %v1556_v25 }
 0x372   : > { %v1818_v35 = vsel %vm1812_vm7, %v1809_v63, %v1604_v48 }
 0x375   : > { %v1684_v59 = vpop.permute.xlu2 %1683 }
 0x378   : > { %v1642_v27 = vpop.permute.xlu1 %1641  ;;  %v1638_v57 = vpop.permute.xlu0 %1637 }
 0x379   : > { %v1824_v42 = vsel %vm1821_vm8, %v1815_v44, %v1642_v27  ;;  %v1822_v29 = vsel %vm1821_vm8, %v1813_v54, %v1638_v57 }
 0x37a   : > { %v1833_v32 = vsel %vm1830_vm9, %v1824_v42, %v1674_v21 }
 0x37d   : > { %v1471_v0 = vpop.permute.xlu2 %1470 }
 0x37e   : > { %v1787_v28 = vsel %vm1785_vm5, %v3538_v58, %v1471_v0 }
 0x380   : > { %v1670_v13 = vpop.permute.xlu1 %1669  ;;  %v1608_v18 = vpop.permute.xlu0 %1607 }
 0x381   : > { %v1831_v19 = vsel %vm1830_vm9, %v1822_v29, %v1670_v13  ;;  %v1820_v50 = vsel %vm1812_vm7, %v1811_v20, %v1608_v18 }
 0x382   : > { %v1840_v47 = vsel %vm1839_vm10, %v1831_v19, %v1718_v2 }
 0x385   : > { %v1732_v34 = vpop.permute.xlu2 %1731 }
 0x388   : > { %v1652_v26 = vpop.permute.xlu1 %1651  ;;  %v1648_v36 = vpop.permute.xlu0 %1647 }
 0x389   : > { %v1827_v38 = vsel %vm1821_vm8, %v1818_v35, %v1648_v36  ;;  %v1829_v31 = vsel %vm1821_vm8, %v1820_v50, %v1652_v26 }
 0x38a   : > { %v1838_v22 = vsel %vm1830_vm9, %v1829_v31, %v1684_v59 }
 0x38b   : > { %v1847_v62 = vsel %vm1839_vm10, %v1838_v22, %v1732_v34 }
 0x38d   : > { %v1772_v3 = vpop.permute.xlu2 %1771 }
 0x390   : > { %v1680_v43 = vpop.permute.xlu1 %1679  ;;  %v1722_v37 = vpop.permute.xlu0 %1721 }
 0x391   : > { %v1842_v17 = vsel %vm1839_vm10, %v1833_v32, %v1722_v37  ;;  %v1836_v10 = vsel %vm1830_vm9, %v1827_v38, %v1680_v43 }
 0x395   : > { %v1552_v12 = vpop.permute.xlu2 %1551 }
 0x398   : > { %v1766_v49 = vpop.permute.xlu1 %1765  ;;  %v1762_v61 = vpop.permute.xlu0 %1761 }
 0x399   : > { %v1849_v5 = vsel %vm1848_vm12, %v1840_v47, %v1762_v61  ;;  %v1851_v60 = vsel %vm1848_vm12, %v1842_v17, %v1766_v49 }
 0x39a   : > { %2304 = vmatmul.msk.f32.vlgmr.msra.gmra.mxu0 %vm1866_vm4, %v1849_v5  ;;  %2306 = vmatmul.msk.f32.vlgmr.msra.gmra.mxu1 %vm1866_vm4, %v1851_v60 }
 0x39d   : > { %v1640_v56 = vpop.permute.xlu2 %1639 }
 0x3a0   : > { %v1728_v24 = vpop.permute.xlu1 %1727  ;;  %v1475_v1 = vpop.permute.xlu0 %1474 }
 0x3a1   : > { %v1845_v30 = vsel %vm1839_vm10, %v1836_v10, %v1728_v24  ;;  %v1789_v55 = vsel %vm1785_vm5, %v3534_v41, %v1475_v1 }
 0x3a2   : > { %v1854_v45 = vsel %vm1848_vm12, %v1845_v30, %v1772_v3 }
 0x3a3   : > { %2309 = vmatmul.msk.f32.gmra.mxu2 %vm1866_vm4, %v1854_v45 }
 0x3a5   : > { %v1676_v39 = vpop.permute.xlu2 %1675 }
 0x3a8   : > { %v1520_v4 = vpop.permute.xlu1 %1519  ;;  %v1516_v16 = vpop.permute.xlu0 %1515 }
 0x3a9   : > { %v1796_v48 = vsel %vm1794_vm2, %v1787_v28, %v1516_v16  ;;  %v1798_v20 = vsel %vm1794_vm2, %v1789_v55, %v1520_v4 }
 0x3aa   : > { %v1807_v57 = vsel %vm1803_vm6, %v1798_v20, %v1552_v12 }
 0x3ad   : > { %v1764_v25 = vpop.permute.xlu2 %1763 }
 0x3b0   : > { %v1548_v53 = vpop.permute.xlu1 %1547  ;;  %v1776_v6 = vpop.permute.xlu0 %1775 }
 0x3b1   : > { %v1856_v40 = vsel %vm1848_vm12, %v1847_v62, %v1776_v6  ;;  %v1805_v7 = vsel %vm1803_vm6, %v1796_v48, %v1548_v53 }
 0x3b2   : > { %2311 = vmatmul.msk.f32.gmra.mxu3 %vm1866_vm4, %v1856_v40 }
 0x3b8   : > { %v1596_v8 = vpop.permute.xlu0 %1595  ;;  %v1600_v9 = vpop.permute.xlu1 %1599 }
 0x3b9   : > { %v1814_v15 = vsel %vm1812_vm7, %v1805_v7, %v1596_v8  ;;  %v1816_v13 = vsel %vm1812_vm7, %v1807_v57, %v1600_v9  ;;  %v2134_v8 = vld [vmem:[%s3839_s13 + $0x20] sm:$0xff] }
 0x3ba   : > { %v1823_v21 = vsel %vm1821_vm8, %v1814_v15, %v1640_v56 }
 0x3c0   : > { %v1644_v11 = vpop.permute.xlu0 %1643  ;;  %v1672_v14 = vpop.permute.xlu1 %1671 }
 0x3c1   : > { %v1832_v51 = vsel %vm1830_vm9, %v1823_v21, %v1672_v14  ;;  %v1825_v41 = vsel %vm1821_vm8, %v1816_v13, %v1644_v11  ;;  %v2136_v11 = vld [vmem:[%s3839_s13 + $0x30] sm:$0xff] }
 0x3c2   : > { %v1834_v59 = vsel %vm1830_vm9, %v1825_v41, %v1676_v39 }
 0x3c8   : > { %v1720_v27 = vpop.permute.xlu0 %1719  ;;  %v1724_v18 = vpop.permute.xlu1 %1723 }
 0x3c9   : > { %v1841_v58 = vsel %vm1839_vm10, %v1832_v51, %v1720_v27  ;;  %v1843_v26 = vsel %vm1839_vm10, %v1834_v59, %v1724_v18 }
 0x3ca   : > { %v1850_v2 = vsel %vm1848_vm12, %v1841_v58, %v1764_v25 }
 0x3cb   : > { %2305 = vmatmul.msk.f32.gmra.mxu0 %vm1866_vm4, %v1850_v2 }
 0x3d0   : > { %v1768_v36 = vpop.permute.xlu0 %1767 }
 0x3d1   : > { %v1852_v0 = vsel %vm1848_vm12, %v1843_v26, %v1768_v36 }
 0x3d2   : > { %2307 = vmatmul.msk.f32.gmra.mxu1 %vm1866_vm4, %v1852_v0 }
 0x3dd   : > { %v1924_v43 = vpop.f32.mrf.mxu2  ;;  %v1930_v37 = vpop.f32.mrf.mxu3 }
 0x3de   : > { %v1925_v46 = vadd.f32 %v3833_v33, %v1924_v43  ;;  %v1931_v44 = vadd.f32 %v3833_v33, %v1930_v37 }
 0x3e0   : > { %v1940_v54 = vmin.f32 %v1925_v46, 20.0  ;;  %v1942_v42 = vmin.f32 %v1931_v44, 20.0  ;;  %vm2116_vm6 = vcmp.gt.f32.partialorder %v1925_v46, 20.0  ;;  %vm2118_vm7 = vcmp.gt.f32.partialorder %v1931_v44, 20.0 }
 0x3e2   : > { %v1952_v29 = vmul.f32 1.442695, %v1940_v54  ;;  %v1956_v19 = vmul.f32 1.442695, %v1942_v42 }
 0x3e4   : > { %2524 = vpow2.f32 %v1952_v29 }
 0x3e5   : > { %2526 = vpow2.f32 %v1956_v19 }
 0x3ea   : > { %v2525_v34 = vpop.eup %2524 }
 0x3eb   : > { %v2527_v32 = vpop.eup %2526  ;;  %v1964_v17 = vadd.f32 2.0, %v2525_v34 }
 0x3ec   : > { %v1966_v49 = vadd.f32 2.0, %v2527_v32 }
 0x3ed   : > { %v1972_v61 = vmul.f32 %v2525_v34, %v1964_v17 }
 0x3ee   : > { %v1974_v47 = vmul.f32 %v2527_v32, %v1966_v49 }
 0x3ef   : > { %v1988_v23 = vadd.f32 2.0, %v1972_v61  ;;  %v1980_v12 = vmul.f32 %v1972_v61, %v1925_v46 }
 0x3f0   : > { %v1990_v5 = vadd.f32 2.0, %v1974_v47  ;;  %v1982_v6 = vmul.f32 %v1974_v47, %v1931_v44 }
 0x3f1   : > { %2528 = vrcp.f32 %v1988_v23  ;;  %v2063_v3 = vand.u32 2147483648, %v1988_v23  ;;  %v2061_v1 = vand.u32 2147483647, %v1988_v23  ;;  %vm2057_vm15 = vweird.f32 %v1988_v23 }
 0x3f2   : > { %2530 = vrcp.f32 %v1990_v5  ;;  %v2093_v30 = vand.u32 2147483648, %v1990_v5  ;;  %v2091_v4 = vand.u32 2147483647, %v1990_v5  ;;  %vm2087_vm1 = vweird.f32 %v1990_v5 }
 0x3f3   : > { %v2064_v50 = vor.u32 1.1754944e-38, %v2063_v3  ;;  %vm2062_vm3 = vcmp.eq.f32.partialorder %v2061_v1, 8.507059e+37 }
 0x3f4   : > { %v2094_v62 = vor.u32 1.1754944e-38, %v2093_v30  ;;  %vm2092_vm2 = vcmp.eq.f32.partialorder %v2091_v4, 8.507059e+37 }
 0x3f7   : > { %v2529_v60 = vpop.eup %2528 }
 0x3f8   : > { %v2531_v52 = vpop.eup %2530  ;;  %v2053_v63 = vmul.f32 %v2529_v60, %v1988_v23  ;;  %vm2058_vm13 = vweird.f32 %v2529_v60 }
 0x3f9   : > { %v2083_v35 = vmul.f32 %v2531_v52, %v1990_v5  ;;  %vm2088_vm14 = vweird.f32 %v2531_v52  ;;  %vm2059_vm0 = vmor %vm2057_vm15, %vm2058_vm13 }
 0x3fa   : > { %v2054_v38 = vsub.f32 1.0, %v2053_v63  ;;  %vm2089_vm11 = vmor %vm2087_vm1, %vm2088_vm14 }
 0x3fb   : > { %v2084_v10 = vsub.f32 1.0, %v2083_v35 }
 0x3fc   : > { %v2055_v24 = vmul.f32 %v2529_v60, %v2054_v38 }
 0x3fd   : > { %v2085_v45 = vmul.f32 %v2531_v52, %v2084_v10 }
 0x3fe   : > { %v2056_v16 = vadd.f32 %v2529_v60, %v2055_v24 }
 0x3ff   : > { %v2086_v31 = vadd.f32 %v2531_v52, %v2085_v45 }
 0x400   : > { %v2060_v22 = vsel %vm2059_vm0, %v2529_v60, %v2056_v16 }
 0x401   : > { %v2065_v53 = vsel %vm2062_vm3, %v2064_v50, %v2060_v22  ;;  %v2090_v40 = vsel %vm2089_vm11, %v2531_v52, %v2086_v31 }
 0x402   : > { %v2066_v56 = vmul.f32 %v2065_v53, %v1980_v12  ;;  %v2095_v9 = vsel %vm2092_vm2, %v2094_v62, %v2090_v40  ;;  %v2130_v62 = vld [vmem:[%s3839_s13] sm:$0xff]  ;;  %v2132_v40 = vld [vmem:[%s3839_s13 + $0x10] sm:$0xff] }
 0x403   : > { %v2096_v39 = vmul.f32 %v2095_v9, %v1982_v6 }
 0x404   : > { %v2124_v28 = vsel %vm2116_vm6, %v1925_v46, %v2066_v56 }
 0x405   : > { %v2142_v48 = vadd.f32 %v2134_v8, %v2124_v28  ;;  %v2126_v7 = vsel %vm2118_vm7, %v1931_v44, %v2096_v39 }
 0x406   : > { %v2144_v14 = vadd.f32 %v2136_v11, %v2126_v7 }
 0x407   : > { %2150 = vst.msk [vmem:[%s2696_s14 + $0x20] sm:$0xff] %vm1785_vm5, %v2142_v48 }
 0x408   : > { %2152 = vst.msk [vmem:[%s2696_s14 + $0x30] sm:$0xff] %vm1785_vm5, %v2144_v14 }
 0x417   : > { %v1912_v15 = vpop.f32.mrf.mxu0  ;;  %v1918_v55 = vpop.f32.mrf.mxu1 }
 0x418   : > { %v3848_v20 = vadd.f32 %v3833_v33, %v1912_v15  ;;  %v3851_v21 = vadd.f32 %v3833_v33, %v1918_v55 }
 0x41a   : > { %v1936_v25 = vmin.f32 %v3848_v20, 20.0  ;;  %v1938_v51 = vmin.f32 %v3851_v21, 20.0  ;;  %vm2112_vm0 = vcmp.gt.f32.partialorder %v3848_v20, 20.0  ;;  %vm2114_vm1 = vcmp.gt.f32.partialorder %v3851_v21, 20.0 }
 0x41c   : > { %v1944_v27 = vmul.f32 1.442695, %v1936_v25  ;;  %v1948_v58 = vmul.f32 1.442695, %v1938_v51 }
 0x41e   : > { %2532 = vpow2.f32 %v1944_v27 }
 0x41f   : > { %2534 = vpow2.f32 %v1948_v58 }
 0x424   : > { %v2533_v57 = vpop.eup %2532 }
 0x425   : > { %v2535_v2 = vpop.eup %2534  ;;  %v1960_v13 = vadd.f32 2.0, %v2533_v57 }
 0x426   : > { %v1962_v41 = vadd.f32 2.0, %v2535_v2  ;;  %v1927_v18 = vpop.f32.mrf.mxu2 }
 0x427   : > { %v1968_v59 = vmul.f32 %v2533_v57, %v1960_v13  ;;  %v3856_v26 = vadd.f32 %v3833_v33, %v1927_v18 }
 0x428   : > { %v1970_v36 = vmul.f32 %v2535_v2, %v1962_v41 }
 0x429   : > { %v1984_v0 = vadd.f32 2.0, %v1968_v59  ;;  %v1941_v43 = vmin.f32 %v3856_v26, 20.0  ;;  %v1976_v52 = vmul.f32 %v1968_v59, %v3848_v20  ;;  %vm2117_vm7 = vcmp.gt.f32.partialorder %v3856_v26, 20.0 }
 0x42a   : > { %v1986_v37 = vadd.f32 2.0, %v1970_v36  ;;  %v1978_v31 = vmul.f32 %v1970_v36, %v3851_v21  ;;  %v2135_v36 = vld [vmem:[%s3839_s13 + $0x28] sm:$0xff] }
 0x42b   : > { %2536 = vrcp.f32 %v1984_v0  ;;  %v1954_v46 = vmul.f32 1.442695, %v1941_v43  ;;  %v2001_v32 = vand.u32 2147483647, %v1984_v0  ;;  %v2003_v17 = vand.u32 2147483648, %v1984_v0 }
 0x42c   : > { %2538 = vrcp.f32 %v1986_v37  ;;  %v2033_v61 = vand.u32 2147483648, %v1986_v37  ;;  %v2031_v35 = vand.u32 2147483647, %v1986_v37  ;;  %vm1997_vm10 = vweird.f32 %v1984_v0 }
 0x42d   : > { %2540 = vpow2.f32 %v1954_v46  ;;  %vm2002_vm4 = vcmp.eq.f32.partialorder %v2001_v32, 8.507059e+37  ;;  %v2004_v24 = vor.u32 1.1754944e-38, %v2003_v17  ;;  %vm2027_vm13 = vweird.f32 %v1986_v37 }
 0x42e   : > { %v2034_v45 = vor.u32 1.1754944e-38, %v2033_v61  ;;  %vm2032_vm15 = vcmp.eq.f32.partialorder %v2031_v35, 8.507059e+37 }
 0x431   : > { %v2537_v44 = vpop.eup %2536 }
 0x432   : > { %v2539_v54 = vpop.eup %2538  ;;  %v1993_v42 = vmul.f32 %v2537_v44, %v1984_v0  ;;  %vm1998_vm8 = vweird.f32 %v2537_v44 }
 0x433   : > { %v2023_v29 = vmul.f32 %v2539_v54, %v1986_v37  ;;  %v2541_v34 = vpop.eup %2540  ;;  %vm2028_vm9 = vweird.f32 %v2539_v54  ;;  %vm1999_vm12 = vmor %vm1997_vm10, %vm1998_vm8 }
 0x434   : > { %v1994_v19 = vsub.f32 1.0, %v1993_v42  ;;  %v1965_v5 = vadd.f32 2.0, %v2541_v34  ;;  %vm2029_vm14 = vmor %vm2027_vm13, %vm2028_vm9 }
 0x435   : > { %v2024_v49 = vsub.f32 1.0, %v2023_v29  ;;  %v1933_v47 = vpop.f32.mrf.mxu3 }
 0x436   : > { %v1995_v23 = vmul.f32 %v2537_v44, %v1994_v19  ;;  %v3860_v60 = vadd.f32 %v3833_v33, %v1933_v47  ;;  %v1973_v3 = vmul.f32 %v2541_v34, %v1965_v5 }
 0x437   : > { %v2025_v63 = vmul.f32 %v2539_v54, %v2024_v49 }
 0x438   : > { %v1996_v38 = vadd.f32 %v2537_v44, %v1995_v23  ;;  %v1943_v10 = vmin.f32 %v3860_v60, 20.0  ;;  %v1989_v4 = vadd.f32 2.0, %v1973_v3  ;;  %v1981_v2 = vmul.f32 %v1973_v3, %v3856_v26  ;;  %v2137_v3 = vld [vmem:[%s3839_s13 + $0x38] sm:$0xff] }
 0x439   : > { %v2026_v1 = vadd.f32 %v2539_v54, %v2025_v63 }
 0x43a   : > { %v2000_v30 = vsel %vm1999_vm12, %v2537_v44, %v1996_v38  ;;  %v1958_v16 = vmul.f32 1.442695, %v1943_v10  ;;  %2542 = vrcp.f32 %v1989_v4  ;;  %v2078_v15 = vand.u32 2147483648, %v1989_v4 }
 0x43b   : > { %v2005_v50 = vsel %vm2002_vm4, %v2004_v24, %v2000_v30  ;;  %v2030_v12 = vsel %vm2029_vm14, %v2539_v54, %v2026_v1  ;;  %vm2072_vm11 = vweird.f32 %v1989_v4  ;;  %vm2119_vm4 = vcmp.gt.f32.partialorder %v3860_v60, 20.0 }
 0x43c   : > { %v2006_v22 = vmul.f32 %v2005_v50, %v1976_v52  ;;  %v2035_v53 = vsel %vm2032_vm15, %v2034_v45, %v2030_v12  ;;  %2544 = vpow2.f32 %v1958_v16  ;;  %v2079_v57 = vor.u32 1.1754944e-38, %v2078_v15 }
 0x43d   : > { %v2036_v6 = vmul.f32 %v2035_v53, %v1978_v31 }
 0x43e   : > { %v2120_v56 = vsel %vm2112_vm0, %v3848_v20, %v2006_v22  ;;  %v2076_v20 = vand.u32 2147483647, %v1989_v4 }
 0x43f   : > { %v2138_v8 = vadd.f32 %v2130_v62, %v2120_v56  ;;  %v2122_v9 = vsel %vm2114_vm1, %v3851_v21, %v2036_v6 }
 0x440   : > { %v2140_v39 = vadd.f32 %v2132_v40, %v2122_v9  ;;  %v2543_v11 = vpop.eup %2542  ;;  %vm2077_vm6 = vcmp.eq.f32.partialorder %v2076_v20, 8.507059e+37 }
 0x441   : > { %2146 = vst.msk [vmem:[%s2696_s14] sm:$0xff] %vm1785_vm5, %v2138_v8  ;;  %v2068_v48 = vmul.f32 %v2543_v11, %v1989_v4  ;;  %vm2073_vm3 = vweird.f32 %v2543_v11 }
 0x442   : > { %2148 = vst.msk [vmem:[%s2696_s14 + $0x10] sm:$0xff] %vm1785_vm5, %v2140_v39  ;;  %v2545_v28 = vpop.eup %2544  ;;  %vm2074_vm2 = vmor %vm2072_vm11, %vm2073_vm3 }
 0x443   : > { %v1967_v7 = vadd.f32 2.0, %v2545_v28  ;;  %v2069_v14 = vsub.f32 1.0, %v2068_v48 }
 0x445   : > { %v1975_v55 = vmul.f32 %v2545_v28, %v1967_v7  ;;  %v2070_v25 = vmul.f32 %v2543_v11, %v2069_v14  ;;  %v2131_v28 = vld [vmem:[%s3839_s13 + $0x8] sm:$0xff] }
 0x447   : > { %v1991_v51 = vadd.f32 2.0, %v1975_v55  ;;  %v2071_v58 = vadd.f32 %v2543_v11, %v2070_v25  ;;  %v1983_v5 = vmul.f32 %v1975_v55, %v3860_v60 }
 0x448   : > { %v1915_v27 = vpop.f32.mrf.mxu0 }
 0x449   : > { %v3876_v21 = vadd.f32 %v3833_v33, %v1915_v27  ;;  %2546 = vrcp.f32 %v1991_v51  ;;  %v2075_v13 = vsel %vm2074_vm2, %v2543_v11, %v2071_v58  ;;  %v2108_v34 = vand.u32 2147483648, %v1991_v51 }
 0x44a   : > { %v2080_v18 = vsel %vm2077_vm6, %v2079_v57, %v2075_v13  ;;  %vm2102_vm9 = vweird.f32 %v1991_v51 }
 0x44b   : > { %v1937_v41 = vmin.f32 %v3876_v21, 20.0  ;;  %v2081_v59 = vmul.f32 %v2080_v18, %v1981_v2  ;;  %vm2113_vm1 = vcmp.gt.f32.partialorder %v3876_v21, 20.0  ;;  %v2133_v2 = vld [vmem:[%s3839_s13 + $0x18] sm:$0xff] }
 0x44d   : > { %v1946_v0 = vmul.f32 1.442695, %v1937_v41  ;;  %v2125_v43 = vsel %vm2117_vm7, %v3856_v26, %v2081_v59  ;;  %v2106_v26 = vand.u32 2147483647, %v1991_v51 }
 0x44e   : > { %v2143_v44 = vadd.f32 %v2135_v36, %v2125_v43 }
 0x44f   : > { %2548 = vpow2.f32 %v1946_v0  ;;  %v1921_v37 = vpop.f32.mrf.mxu1  ;;  %v2547_v46 = vpop.eup %2546  ;;  %vm2107_vm12 = vcmp.eq.f32.partialorder %v2106_v26, 8.507059e+37 }
 0x450   : > { %v3884_v54 = vadd.f32 %v3833_v33, %v1921_v37  ;;  %v2098_v42 = vmul.f32 %v2547_v46, %v1991_v51  ;;  %2151 = vst.msk [vmem:[%s2696_s14 + $0x28] sm:$0xff] %vm1785_vm5, %v2143_v44  ;;  %vm2103_vm8 = vweird.f32 %v2547_v46  ;;  %v2109_v33 = vor.u32 1.1754944e-38, %v2108_v34 }
 0x451   : > { %vm2104_vm10 = vmor %vm2102_vm9, %vm2103_vm8 }
 0x452   : > { %v1939_v29 = vmin.f32 %v3884_v54, 20.0  ;;  %v2099_v19 = vsub.f32 1.0, %v2098_v42  ;;  %vm2115_vm7 = vcmp.gt.f32.partialorder %v3884_v54, 20.0 }
 0x454   : > { %v1950_v32 = vmul.f32 1.442695, %v1939_v29  ;;  %v2100_v49 = vmul.f32 %v2547_v46, %v2099_v19 }
 0x455   : > { %v2549_v17 = vpop.eup %2548 }
 0x456   : > { %v1961_v61 = vadd.f32 2.0, %v2549_v17  ;;  %2550 = vpow2.f32 %v1950_v32  ;;  %v2101_v47 = vadd.f32 %v2547_v46, %v2100_v49 }
 0x458   : > { %v1969_v23 = vmul.f32 %v2549_v17, %v1961_v61  ;;  %v2105_v52 = vsel %vm2104_vm10, %v2547_v46, %v2101_v47 }
 0x459   : > { %v2110_v63 = vsel %vm2107_vm12, %v2109_v33, %v2105_v52 }
 0x45a   : > { %v1985_v35 = vadd.f32 2.0, %v1969_v23  ;;  %v2111_v38 = vmul.f32 %v2110_v63, %v1983_v5  ;;  %v1977_v56 = vmul.f32 %v1969_v23, %v3876_v21 }
 0x45c   : > { %v2551_v10 = vpop.eup %2550  ;;  %2552 = vrcp.f32 %v1985_v35  ;;  %v2127_v24 = vsel %vm2119_vm4, %v3860_v60, %v2111_v38  ;;  %v2018_v12 = vand.u32 2147483648, %v1985_v35  ;;  %v2016_v62 = vand.u32 2147483647, %v1985_v35 }
 0x45d   : > { %v1963_v1 = vadd.f32 2.0, %v2551_v10  ;;  %v2145_v30 = vadd.f32 %v2137_v3, %v2127_v24  ;;  %vm2012_vm14 = vweird.f32 %v1985_v35 }
 0x45e   : > { %v2019_v60 = vor.u32 1.1754944e-38, %v2018_v12  ;;  %vm2017_vm0 = vcmp.eq.f32.partialorder %v2016_v62, 8.507059e+37 }
 0x45f   : > { %v1971_v45 = vmul.f32 %v2551_v10, %v1963_v1  ;;  %2153 = vst.msk [vmem:[%s2696_s14 + $0x38] sm:$0xff] %vm1785_vm5, %v2145_v30 }
 0x461   : > { %v1987_v4 = vadd.f32 2.0, %v1971_v45  ;;  %v1979_v51 = vmul.f32 %v1971_v45, %v3884_v54 }
 0x462   : > { %v2553_v16 = vpop.eup %2552 }
 0x463   : > { %v2008_v50 = vmul.f32 %v2553_v16, %v1985_v35  ;;  %2554 = vrcp.f32 %v1987_v4  ;;  %vm2013_vm13 = vweird.f32 %v2553_v16  ;;  %v2048_v48 = vand.u32 2147483648, %v1987_v4 }
 0x464   : > { %vm2014_vm15 = vmor %vm2012_vm14, %vm2013_vm13  ;;  %v2046_v14 = vand.u32 2147483647, %v1987_v4  ;;  %vm2042_vm11 = vweird.f32 %v1987_v4 }
 0x465   : > { %v2009_v31 = vsub.f32 1.0, %v2008_v50  ;;  %v2049_v20 = vor.u32 1.1754944e-38, %v2048_v48 }
 0x466   : > { %vm2047_vm6 = vcmp.eq.f32.partialorder %v2046_v14, 8.507059e+37 }
 0x467   : > { %v2010_v22 = vmul.f32 %v2553_v16, %v2009_v31 }
 0x469   : > { %v2555_v53 = vpop.eup %2554  ;;  %v2011_v6 = vadd.f32 %v2553_v16, %v2010_v22 }
 0x46a   : > { %v2038_v40 = vmul.f32 %v2555_v53, %v1987_v4  ;;  %vm2043_vm3 = vweird.f32 %v2555_v53 }
 0x46b   : > { %v2015_v8 = vsel %vm2014_vm15, %v2553_v16, %v2011_v6  ;;  %vm2044_vm2 = vmor %vm2042_vm11, %vm2043_vm3 }
 0x46c   : > { %v2020_v9 = vsel %vm2017_vm0, %v2019_v60, %v2015_v8  ;;  %v2039_v39 = vsub.f32 1.0, %v2038_v40 }
 0x46d   : > { %v2021_v11 = vmul.f32 %v2020_v9, %v1977_v56 }
 0x46e   : > { %v2040_v7 = vmul.f32 %v2555_v53, %v2039_v39 }
 0x46f   : > { %v2121_v15 = vsel %vm2113_vm1, %v3876_v21, %v2021_v11 }
 0x470   : > { %v2139_v55 = vadd.f32 %v2131_v28, %v2121_v15  ;;  %v2041_v25 = vadd.f32 %v2555_v53, %v2040_v7 }
 0x472   : > { %2147 = vst.msk [vmem:[%s2696_s14 + $0x8] sm:$0xff] %vm1785_vm5, %v2139_v55  ;;  %v2045_v27 = vsel %vm2044_vm2, %v2555_v53, %v2041_v25 }
 0x473   : > { %v2050_v58 = vsel %vm2047_vm6, %v2049_v20, %v2045_v27 }
 0x474   : > { %v2051_v57 = vmul.f32 %v2050_v58, %v1979_v51 }
 0x476   : > { %v2123_v13 = vsel %vm2115_vm7, %v3884_v54, %v2051_v57 }
 0x477   : > { %v2141_v21 = vadd.f32 %v2133_v2, %v2123_v13 }
 0x479   : > { %2149 = vst.msk [vmem:[%s2696_s14 + $0x18] sm:$0xff] %vm1785_vm5, %v2141_v21 }
 0x47a PF: > { %s15_s22 = sadd.s32 1, %s2594_s22   ;;  %s3958_s18 = smov %s2586_s20 }
 0x47b   : > { %p12_p12 = scmp.ge.s32.totalorder %s15_s22, 10   ;;  %s3959_s19 = smov %s2590_s21 }
 0x47c   : > { %s3960_s20 = smov %s3963_s23  ;;  %s3961_s21 = smov %s3967_s24 }
 0x47d   :  { %14 = sbr.rel (!%p12_p12) target bundleno = 3 (0x3), region = 89 }

</bundles_post_ra>
